<compile_context>
chip_gen: v5e
topology: v5e:2x2
jax: 0.10.0
libtpu: 0.0.40
codegen_flags: <defaults>
</compile_context>

<pallas_src>
import functools

import jax
import jax.numpy as jnp
from jax.experimental import pallas as pl
from jax.experimental.pallas import tpu as pltpu


IN_DIM = 4 * 16 * 16
HIDDEN = 256
N_PAD = 128          # lane-dense padded action dimension (>= num_actions)


def _round_up(x, m):
    return (x + m - 1) // m * m


def _tpu_generation():
    """Best-effort TPU generation (5 / 6 / 7); defaults to 6."""
    try:
        kind = jax.devices()[0].device_kind.lower()
    except Exception:
        return 6
    if "v7" in kind:
        return 7
    if "v5" in kind:
        return 5
    if "v6" in kind:
        return 6
    return 6


def dqn_mlp_kernel(x_ref,
                   w1_ref, b1_ref,
                   w2_ref, b2_ref,
                   w3_ref, b3_ref,
                   w4_ref, b4_ref,
                   o_ref,
                   *, cast_before_relu):
    """Fused 4-layer MLP for one batch tile: (Linear+ReLU) x3 -> Linear.

    x arrives f32 and is cast to bf16 in-kernel; weights are bf16; all matmuls
    accumulate in f32; biases and output are f32."""
    x = x_ref[...].astype(jnp.bfloat16)          # in-kernel f32 -> bf16 cast

    def hidden_layer(h, w_ref, b_ref):
        a = jnp.dot(h, w_ref[...], preferred_element_type=jnp.float32) + b_ref[...]
        if cast_before_relu:
            # v6e/v7x: max on packed bf16 (half the VPU vregs). max(round(x),0)
            # == round(max(x,0)), so this is numerically identical.
            return jnp.maximum(a.astype(jnp.bfloat16), 0.0)
        # v5e: no bf16 VPU -> do the max in f32, then pack.
        return jnp.maximum(a, 0.0).astype(jnp.bfloat16)

    h = hidden_layer(x, w1_ref, b1_ref)
    h = hidden_layer(h, w2_ref, b2_ref)
    h = hidden_layer(h, w3_ref, b3_ref)

    q = jnp.dot(h, w4_ref[...], preferred_element_type=jnp.float32) + b4_ref[...]
    o_ref[...] = q.astype(o_ref.dtype)


def prepare_params(params, n_pad=N_PAD):
    """One-time parameter preparation (hoisted out of the forward pass).

    Casts weights to bf16, biases to f32, and zero-pads the last layer's
    output dimension to a full 128-lane tile.  Padded columns produce exact
    zeros and are sliced off after the kernel."""
    (w1, b1), (w2, b2), (w3, b3), (w4, b4) = params
    a = w4.shape[1]
    assert a <= n_pad, "num_actions must fit in one 128-lane tile"
    w4p = jnp.zeros((w4.shape[0], n_pad), w4.dtype).at[:, :a].set(w4)
    b4p = jnp.zeros((1, n_pad), b4.dtype).at[:, :a].set(b4)
    return (
        w1.astype(jnp.bfloat16), b1.astype(jnp.float32),
        w2.astype(jnp.bfloat16), b2.astype(jnp.float32),
        w3.astype(jnp.bfloat16), b3.astype(jnp.float32),
        w4p.astype(jnp.bfloat16), b4p.astype(jnp.float32),
    )


def _choose_tiling(batch, gen, tb_max):
    """Pick (TB, Bp, n_tiles) with minimal padding; >=2 tiles on v7x."""
    b16 = _round_up(batch, 16)                 # sublane-friendly batch
    n_tiles = pl.cdiv(b16, tb_max)
    if gen == 7 and b16 >= 32:
        n_tiles = max(n_tiles, 2)              # use both v7x TensorCores
    tb = _round_up(pl.cdiv(b16, n_tiles), 16)
    bp = n_tiles * tb
    return tb, bp, n_tiles


def _resident_map(i):        # weights/biases: same block every step -> VMEM-resident
    return (0, 0)


def _tile_map(i):            # batch-tiled arrays
    return (i, 0)


@functools.partial(jax.jit, static_argnames=("num_actions",))
def dqn_forward(x_nchw, prepared, num_actions):
    """x_nchw: (B, 4, 16, 16) float32.  Returns (B, num_actions) float32."""
    w1, b1, w2, b2, w3, b3, w4, b4 = prepared
    B = x_nchw.shape[0]
    K = x_nchw.shape[1] * x_nchw.shape[2] * x_nchw.shape[3]
    x = x_nchw.reshape(B, K)                   # nn.Flatten(); stays f32

    gen = _tpu_generation()
    tb_max = {5: 512, 6: 1024, 7: 512}.get(gen, 512)
    TB, Bp, n_tiles = _choose_tiling(B, gen, tb_max)
    if Bp != B:                                # pad only when strictly needed
        x = jnp.pad(x, ((0, Bp - B), (0, 0)))

    flops = 2 * Bp * (K * HIDDEN + 2 * HIDDEN * HIDDEN + HIDDEN * N_PAD)
    bytes_accessed = (
        Bp * K * 4                                                   # x (f32)
        + (K * HIDDEN + 2 * HIDDEN * HIDDEN + HIDDEN * N_PAD) * 2    # weights (bf16)
        + (3 * HIDDEN + N_PAD) * 4                                   # biases (f32)
        + Bp * N_PAD * 4                                             # output (f32)
    )

    kernel = functools.partial(dqn_mlp_kernel,
                               cast_before_relu=(gen != 5))

    out = pl.pallas_call(
        kernel,
        out_shape=jax.ShapeDtypeStruct((Bp, N_PAD), jnp.float32),
        grid=(n_tiles,),
        in_specs=[
            pl.BlockSpec((TB, K), _tile_map),
            pl.BlockSpec(w1.shape, _resident_map),
            pl.BlockSpec(b1.shape, _resident_map),
            pl.BlockSpec(w2.shape, _resident_map),
            pl.BlockSpec(b2.shape, _resident_map),
            pl.BlockSpec(w3.shape, _resident_map),
            pl.BlockSpec(b3.shape, _resident_map),
            pl.BlockSpec(w4.shape, _resident_map),
            pl.BlockSpec(b4.shape, _resident_map),
        ],
        out_specs=pl.BlockSpec((TB, N_PAD), _tile_map),
        compiler_params=pltpu.CompilerParams(
            dimension_semantics=("parallel",),
            vmem_limit_bytes=32 * 1024 * 1024),
        cost_estimate=pl.CostEstimate(
            flops=flops, bytes_accessed=bytes_accessed, transcendentals=0),
    )(x, w1, b1, w2, b2, w3, b3, w4, b4)

    # Drop batch padding and the lane padding of the action dimension.
    return out[:B, :num_actions]


def init_params(key, in_dim=IN_DIM, hidden=HIDDEN, num_actions=6):
    """Deterministic init mimicking nn.Linear default (uniform +-1/sqrt(fan_in)).

    Weights stored as (in, out) so the kernel does x @ W + b."""
    dims = [(in_dim, hidden), (hidden, hidden), (hidden, hidden), (hidden, num_actions)]
    params = []
    for (fan_in, fan_out) in dims:
        key, kw, kb = jax.random.split(key, 3)
        bound = 1.0 / (fan_in ** 0.5)
        w = jax.random.uniform(kw, (fan_in, fan_out), jnp.float32, -bound, bound)
        b = jax.random.uniform(kb, (1, fan_out), jnp.float32, -bound, bound)
        params.append((w, b))
    return params


def _reference_bf16(x_nchw, params):
    """Pure-JAX reference with the same bf16-in / f32-accumulate recipe."""
    B = x_nchw.shape[0]
    h = x_nchw.reshape(B, -1).astype(jnp.bfloat16)
    for i, (w, b) in enumerate(params):
        h = jnp.dot(h, w.astype(jnp.bfloat16),
                    preferred_element_type=jnp.float32) + b
        if i < len(params) - 1:
            h = jnp.maximum(h, 0.0).astype(jnp.bfloat16)
    return h


def _reference_f32(x_nchw, params):
    """Exact f32 reference of the original PyTorch forward."""
    B = x_nchw.shape[0]
    h = x_nchw.reshape(B, -1)
    for i, (w, b) in enumerate(params):
        h = h @ w + b
        if i < len(params) - 1:
            h = jnp.maximum(h, 0.0)
    return h


if __name__ == "__main__":
    key = jax.random.PRNGKey(0)
    key, kx = jax.random.split(key)

    B, C, H, W = 2, 4, 16, 16
    num_actions = 6

    x = jax.random.normal(kx, (B, C, H, W), jnp.float32)
    raw_params = init_params(key, in_dim=C * H * W, hidden=HIDDEN,
                             num_actions=num_actions)

    # One-time weight preparation (bf16 cast + lane padding), reused every call.
    prepared = jax.block_until_ready(prepare_params(raw_params))

    q = dqn_forward(x, prepared, num_actions)
    q = jax.block_until_ready(q)
    assert q.shape == (B, num_actions)

    # Tight check against a bf16-cast / f32-accumulate reference.
    ref_bf16 = _reference_bf16(x, raw_params)
    assert jnp.allclose(q, ref_bf16, atol=1e-2, rtol=1e-2)

    # Looser check against the exact f32 semantics of the original module
    # (bf16 weight cast loses mantissa bits).
    ref_f32 = _reference_f32(x, raw_params)
    assert jnp.allclose(q, ref_f32, atol=5e-2, rtol=5e-2)

    print("KERNEL_OK")
</pallas_src>

<mosaic_0001>
module attributes {stable_mosaic.version = 11 : i64} {
  func.func @dqn_mlp_kernel(%arg0: i32, %arg1: memref<16x1024xf32, #tpu.memory_space<vmem>>, %arg2: memref<1024x256xbf16, #tpu.memory_space<vmem>>, %arg3: memref<1x256xf32, #tpu.memory_space<vmem>>, %arg4: memref<256x256xbf16, #tpu.memory_space<vmem>>, %arg5: memref<1x256xf32, #tpu.memory_space<vmem>>, %arg6: memref<256x256xbf16, #tpu.memory_space<vmem>>, %arg7: memref<1x256xf32, #tpu.memory_space<vmem>>, %arg8: memref<256x128xbf16, #tpu.memory_space<vmem>>, %arg9: memref<1x128xf32, #tpu.memory_space<vmem>>, %arg10: memref<16x128xf32, #tpu.memory_space<vmem>>) attributes {dimension_semantics = [#tpu.dimension_semantics<parallel>], iteration_bounds = array<i64: 1>, scalar_prefetch = 0 : i64, scratch_operands = 0 : i64, tpu.core_type = #tpu.core_type<tc>, window_params = [{transform_indices = @transform_0, window_bounds = array<i64: 16, 1024>}, {pipeline_mode = #tpu.pipeline_mode<synchronous>, transform_indices = @transform_1, window_bounds = array<i64: 1024, 256>}, {pipeline_mode = #tpu.pipeline_mode<synchronous>, transform_indices = @transform_2, window_bounds = array<i64: 1, 256>}, {pipeline_mode = #tpu.pipeline_mode<synchronous>, transform_indices = @transform_3, window_bounds = array<i64: 256, 256>}, {pipeline_mode = #tpu.pipeline_mode<synchronous>, transform_indices = @transform_4, window_bounds = array<i64: 1, 256>}, {pipeline_mode = #tpu.pipeline_mode<synchronous>, transform_indices = @transform_5, window_bounds = array<i64: 256, 256>}, {pipeline_mode = #tpu.pipeline_mode<synchronous>, transform_indices = @transform_6, window_bounds = array<i64: 1, 256>}, {pipeline_mode = #tpu.pipeline_mode<synchronous>, transform_indices = @transform_7, window_bounds = array<i64: 256, 128>}, {pipeline_mode = #tpu.pipeline_mode<synchronous>, transform_indices = @transform_8, window_bounds = array<i64: 1, 128>}, {transform_indices = @transform_9, window_bounds = array<i64: 16, 128>}]} {
    %c0 = arith.constant 0 : index
    %c0_0 = arith.constant 0 : index
    %0 = vector.load %arg1[%c0, %c0_0] : memref<16x1024xf32, #tpu.memory_space<vmem>>, vector<16x1024xf32>
    %1 = arith.truncf %0 : vector<16x1024xf32> to vector<16x1024xbf16>
    %c0_1 = arith.constant 0 : index
    %c0_2 = arith.constant 0 : index
    %2 = vector.load %arg2[%c0_1, %c0_2] : memref<1024x256xbf16, #tpu.memory_space<vmem>>, vector<1024x256xbf16>
    %cst = arith.constant dense<0.000000e+00> : vector<16x256xf32>
    %3 = tpu.matmul %1, %2, %cst {dimension_numbers = #tpu.dot_dimension_numbers<[1], [0], [0], [1], [0, 0, 1, 1], [], []>} : vector<16x1024xbf16>, vector<1024x256xbf16>, vector<16x256xf32> -> vector<16x256xf32>
    %c0_3 = arith.constant 0 : index
    %c0_4 = arith.constant 0 : index
    %4 = vector.load %arg3[%c0_3, %c0_4] : memref<1x256xf32, #tpu.memory_space<vmem>>, vector<1x256xf32>
    %5 = vector.broadcast %4 : vector<1x256xf32> to vector<16x256xf32>
    %6 = arith.addf %3, %5 : vector<16x256xf32>
    %7 = arith.truncf %6 : vector<16x256xf32> to vector<16x256xbf16>
    %cst_5 = arith.constant 0.000000e+00 : bf16
    %8 = vector.broadcast %cst_5 : bf16 to vector<16x256xbf16>
    %9 = arith.maximumf %7, %8 : vector<16x256xbf16>
    %c0_6 = arith.constant 0 : index
    %c0_7 = arith.constant 0 : index
    %10 = vector.load %arg4[%c0_6, %c0_7] : memref<256x256xbf16, #tpu.memory_space<vmem>>, vector<256x256xbf16>
    %cst_8 = arith.constant dense<0.000000e+00> : vector<16x256xf32>
    %11 = tpu.matmul %9, %10, %cst_8 {dimension_numbers = #tpu.dot_dimension_numbers<[1], [0], [0], [1], [0, 0, 1, 1], [], []>} : vector<16x256xbf16>, vector<256x256xbf16>, vector<16x256xf32> -> vector<16x256xf32>
    %c0_9 = arith.constant 0 : index
    %c0_10 = arith.constant 0 : index
    %12 = vector.load %arg5[%c0_9, %c0_10] : memref<1x256xf32, #tpu.memory_space<vmem>>, vector<1x256xf32>
    %13 = vector.broadcast %12 : vector<1x256xf32> to vector<16x256xf32>
    %14 = arith.addf %11, %13 : vector<16x256xf32>
    %15 = arith.truncf %14 : vector<16x256xf32> to vector<16x256xbf16>
    %cst_11 = arith.constant 0.000000e+00 : bf16
    %16 = vector.broadcast %cst_11 : bf16 to vector<16x256xbf16>
    %17 = arith.maximumf %15, %16 : vector<16x256xbf16>
    %c0_12 = arith.constant 0 : index
    %c0_13 = arith.constant 0 : index
    %18 = vector.load %arg6[%c0_12, %c0_13] : memref<256x256xbf16, #tpu.memory_space<vmem>>, vector<256x256xbf16>
    %cst_14 = arith.constant dense<0.000000e+00> : vector<16x256xf32>
    %19 = tpu.matmul %17, %18, %cst_14 {dimension_numbers = #tpu.dot_dimension_numbers<[1], [0], [0], [1], [0, 0, 1, 1], [], []>} : vector<16x256xbf16>, vector<256x256xbf16>, vector<16x256xf32> -> vector<16x256xf32>
    %c0_15 = arith.constant 0 : index
    %c0_16 = arith.constant 0 : index
    %20 = vector.load %arg7[%c0_15, %c0_16] : memref<1x256xf32, #tpu.memory_space<vmem>>, vector<1x256xf32>
    %21 = vector.broadcast %20 : vector<1x256xf32> to vector<16x256xf32>
    %22 = arith.addf %19, %21 : vector<16x256xf32>
    %23 = arith.truncf %22 : vector<16x256xf32> to vector<16x256xbf16>
    %cst_17 = arith.constant 0.000000e+00 : bf16
    %24 = vector.broadcast %cst_17 : bf16 to vector<16x256xbf16>
    %25 = arith.maximumf %23, %24 : vector<16x256xbf16>
    %c0_18 = arith.constant 0 : index
    %c0_19 = arith.constant 0 : index
    %26 = vector.load %arg8[%c0_18, %c0_19] : memref<256x128xbf16, #tpu.memory_space<vmem>>, vector<256x128xbf16>
    %cst_20 = arith.constant dense<0.000000e+00> : vector<16x128xf32>
    %27 = tpu.matmul %25, %26, %cst_20 {dimension_numbers = #tpu.dot_dimension_numbers<[1], [0], [0], [1], [0, 0, 1, 1], [], []>} : vector<16x256xbf16>, vector<256x128xbf16>, vector<16x128xf32> -> vector<16x128xf32>
    %c0_21 = arith.constant 0 : index
    %c0_22 = arith.constant 0 : index
    %28 = vector.load %arg9[%c0_21, %c0_22] : memref<1x128xf32, #tpu.memory_space<vmem>>, vector<1x128xf32>
    %29 = vector.broadcast %28 : vector<1x128xf32> to vector<16x128xf32>
    %30 = arith.addf %27, %29 : vector<16x128xf32>
    %c0_23 = arith.constant 0 : index
    %c0_24 = arith.constant 0 : index
    %31 = vector.load %arg10[%c0_23, %c0_24] : memref<16x128xf32, #tpu.memory_space<vmem>>, vector<16x128xf32>
    tpu.vector_store %arg10[%c0_23, %c0_24], %30 {strides = array<i32>} : memref<16x128xf32, #tpu.memory_space<vmem>>, vector<16x128xf32>,
    return
  }
  func.func @transform_0(%arg0: i32) -> (i32, i32) {
    %c0_i32 = arith.constant 0 : i32
    %c0_i32_0 = arith.constant 0 : i32
    return %arg0, %c0_i32 : i32, i32
  }
  func.func @transform_1(%arg0: i32) -> (i32, i32) {
    %c0_i32 = arith.constant 0 : i32
    %c0_i32_0 = arith.constant 0 : i32
    %c0_i32_1 = arith.constant 0 : i32
    return %c0_i32, %c0_i32_0 : i32, i32
  }
  func.func @transform_2(%arg0: i32) -> (i32, i32) {
    %c0_i32 = arith.constant 0 : i32
    %c0_i32_0 = arith.constant 0 : i32
    %c0_i32_1 = arith.constant 0 : i32
    return %c0_i32, %c0_i32_0 : i32, i32
  }
  func.func @transform_3(%arg0: i32) -> (i32, i32) {
    %c0_i32 = arith.constant 0 : i32
    %c0_i32_0 = arith.constant 0 : i32
    %c0_i32_1 = arith.constant 0 : i32
    return %c0_i32, %c0_i32_0 : i32, i32
  }
  func.func @transform_4(%arg0: i32) -> (i32, i32) {
    %c0_i32 = arith.constant 0 : i32
    %c0_i32_0 = arith.constant 0 : i32
    %c0_i32_1 = arith.constant 0 : i32
    return %c0_i32, %c0_i32_0 : i32, i32
  }
  func.func @transform_5(%arg0: i32) -> (i32, i32) {
    %c0_i32 = arith.constant 0 : i32
    %c0_i32_0 = arith.constant 0 : i32
    %c0_i32_1 = arith.constant 0 : i32
    return %c0_i32, %c0_i32_0 : i32, i32
  }
  func.func @transform_6(%arg0: i32) -> (i32, i32) {
    %c0_i32 = arith.constant 0 : i32
    %c0_i32_0 = arith.constant 0 : i32
    %c0_i32_1 = arith.constant 0 : i32
    return %c0_i32, %c0_i32_0 : i32, i32
  }
  func.func @transform_7(%arg0: i32) -> (i32, i32) {
    %c0_i32 = arith.constant 0 : i32
    %c0_i32_0 = arith.constant 0 : i32
    %c0_i32_1 = arith.constant 0 : i32
    return %c0_i32, %c0_i32_0 : i32, i32
  }
  func.func @transform_8(%arg0: i32) -> (i32, i32) {
    %c0_i32 = arith.constant 0 : i32
    %c0_i32_0 = arith.constant 0 : i32
    %c0_i32_1 = arith.constant 0 : i32
    return %c0_i32, %c0_i32_0 : i32, i32
  }
  func.func @transform_9(%arg0: i32) -> (i32, i32) {
    %c0_i32 = arith.constant 0 : i32
    %c0_i32_0 = arith.constant 0 : i32
    return %arg0, %c0_i32 : i32, i32
  }
}

</mosaic_0001>

<bundles_post_ra>
// kernel: dqn_forward.1
= control target key start
LH: loop header
LB: loop body
LE: loop exit
PB: predicated region body
PF: predicated region fallthrough
CT: control target
= control target key end

     0   :  { %14 = vsyncpa [#allocation3], 0  ;;  %s3297_s0 = inlined_call_operand.vmem [shape: f32[16,1024], index: 0, kind: input, shape index: {}]   ;;  %s3298_s1 = inlined_call_operand.hbm [shape: bf16[1024,256], index: 1, kind: input, shape index: {}]   ;;  %s3299_s2 = inlined_call_operand.vmem [shape: f32[1,256], index: 2, kind: input, shape index: {}]   ;;  %s3300_s3 = inlined_call_operand.vmem [shape: bf16[256,256], index: 3, kind: input, shape index: {}]   ;;  %s3301_s4 = inlined_call_operand.vmem [shape: f32[1,256], index: 4, kind: input, shape index: {}]   ;;  %s3302_s5 = inlined_call_operand.hbm [shape: bf16[256,256], index: 5, kind: input, shape index: {}]   ;;  %s3303_s6 = inlined_call_operand.vmem [shape: f32[1,256], index: 6, kind: input, shape index: {}]   ;;  %s3304_s7 = inlined_call_operand.hbm [shape: bf16[256,128], index: 7, kind: input, shape index: {}]   ;;  %s3305_s8 = inlined_call_operand.vmem [shape: f32[1,128], index: 8, kind: input, shape index: {}]   ;;  %s3306_s9 = inlined_call_operand.vmem [shape: f32[16,128], index: 9, kind: output, shape index: {}]  }
   0x1   :  { %15 = vsyncpa [#allocation5], 0  ;;  %s41_s11 = sshll.u32 %s3302_s5, 4  ;;  %s2937_s12 = smov [#allocation4]   ;;  %s42_s11 = int_to_ptr.hbm [resolvable:$true] %s41_s11 }
   0x2   :  { %s43_s13 = sshll.u32 %s2937_s12, 4  ;;  %s22_s16 = sshll.u32 %s3298_s1, 4  ;;  %s44_s13 = int_to_ptr.vmem [resolvable:$true] %s43_s13  ;;  %s23_s16 = int_to_ptr.hbm [resolvable:$true] %s22_s16 }
   0x3   :  { %s2938_s17 = smov 128   ;;  %s2939_s18 = smov 8  }
   0x4   :  { %49 = dma.hbm_to_vmem [thread:$0]  %s42_s11, 4096, %s44_s13, [#allocation5], %s2938_s17, %s2938_s17, %s2939_s18  }
   0x5   :  { %s2940_s19 = smov [#allocation2]   ;;  %s56_s23 = sshll.u32 %s3304_s7, 4  ;;  %s57_s23 = int_to_ptr.hbm [resolvable:$true] %s56_s23 }
   0x6   :  { %s24_s20 = sshll.u32 %s2940_s19, 4  ;;  %s2941_s5 = smov [#allocation6]   ;;  %s25_s20 = int_to_ptr.vmem [resolvable:$true] %s24_s20 }
   0x7   :  { %30 = dma.hbm_to_vmem [thread:$0]  %s23_s16, 16384, %s25_s20, [#allocation3], %s2938_s17, %s2938_s17, %s2939_s18  }
   0x8   :  { %s58_s24 = sshll.u32 %s2941_s5, 4  ;;  %s2942_s25 = smov 64   ;;  %s59_s24 = int_to_ptr.vmem [resolvable:$true] %s58_s24 }
   0x9   :  { %s2943_s26 = smov 4  }
   0xa   :  { %64 = dma.hbm_to_vmem [thread:$0]  %s57_s23, 2048, %s59_s24, [#allocation5], %s2942_s25, %s2942_s25, %s2943_s26  }
   0xb   :  { %2933 = dma.done.wait [#allocation3], 16384  }
   0xc   :  { %2934 = vsyncadd [#allocation3], 4294950912 }
   0xd   :  { %2935 = dma.done.wait [#allocation5], 6144  }
   0xe   :  { %2936 = vsyncadd [#allocation5], 4294961152  ;;  %v1871_v0 = vld [vmem:[#allocation2 + $0x70] sm:$0xf]  ;;  %v2660_v1 = vld [vmem:[#allocation2 + $0x74] sm:$0xf0] }
   0xf   :  { %v1935_v2 = vld [vmem:[#allocation2 + $0xf0] sm:$0xf]  ;;  %v1872_v3 = vor.u32 %v2660_v1, %v1871_v0  ;;  %v2676_v4 = vld [vmem:[#allocation2 + $0xf4] sm:$0xf0]  ;;  %v1863_v11 = vld [vmem:[#allocation2 + $0x60] sm:$0xf] }
  0x10   :  { %v1999_v5 = vld [vmem:[#allocation2 + $0x170] sm:$0xf]  ;;  %v2692_v6 = vld [vmem:[#allocation2 + $0x174] sm:$0xf0]  ;;  %v1936_v7 = vor.u32 %v2676_v4, %v1935_v2  ;;  %v2658_v13 = vld [vmem:[#allocation2 + $0x64] sm:$0xf0] }
  0x11   :  { %v2000_v8 = vor.u32 %v2692_v6, %v1999_v5  ;;  %v2063_v9 = vld [vmem:[#allocation2 + $0x1f0] sm:$0xf]  ;;  %v2708_v10 = vld [vmem:[#allocation2 + $0x1f4] sm:$0xf0]  ;;  %877 = vmatpush.bf16.msra.mxu0 %v1872_v3  ;;  %v1927_v14 = vld [vmem:[#allocation2 + $0xe0] sm:$0xf]  ;;  %v1864_v16 = vor.u32 %v2658_v13, %v1863_v11 }
  0x12   :  { %v2064_v12 = vor.u32 %v2708_v10, %v2063_v9  ;;  %v2674_v15 = vld [vmem:[#allocation2 + $0xe4] sm:$0xf0]  ;;  %891 = vmatpush.bf16.msra.mxu1 %v1936_v7  ;;  %v1991_v18 = vld [vmem:[#allocation2 + $0x160] sm:$0xf]  ;;  %v1855_v23 = vld [vmem:[#allocation2 + $0x50] sm:$0xf] }
  0x13   :  { %905 = vmatpush.bf16.msra.mxu2 %v2000_v8  ;;  %v1928_v17 = vor.u32 %v2674_v15, %v1927_v14  ;;  %v2690_v19 = vld [vmem:[#allocation2 + $0x164] sm:$0xf0]  ;;  %v2055_v20 = vld [vmem:[#allocation2 + $0x1e0] sm:$0xf]  ;;  %v2656_v24 = vld [vmem:[#allocation2 + $0x54] sm:$0xf0] }
  0x14   :  { %919 = vmatpush.bf16.msra.mxu3 %v2064_v12  ;;  %v1992_v21 = vor.u32 %v2690_v19, %v1991_v18  ;;  %v2706_v22 = vld [vmem:[#allocation2 + $0x1e4] sm:$0xf0]  ;;  %v1919_v26 = vld [vmem:[#allocation2 + $0xd0] sm:$0xf]  ;;  %v2672_v27 = vld [vmem:[#allocation2 + $0xd4] sm:$0xf0]  ;;  %v1856_v29 = vor.u32 %v2656_v24, %v1855_v23 }
  0x15   :  { %v2056_v25 = vor.u32 %v2706_v22, %v2055_v20  ;;  %v1983_v28 = vld [vmem:[#allocation2 + $0x150] sm:$0xf]  ;;  %878 = vmatpush.bf16.msra.mxu0 %v1864_v16  ;;  %v2688_v30 = vld [vmem:[#allocation2 + $0x154] sm:$0xf0]  ;;  %v1920_v33 = vor.u32 %v2672_v27, %v1919_v26  ;;  %v1847_v35 = vld [vmem:[#allocation2 + $0x40] sm:$0xf] }
  0x16   :  { %v2047_v31 = vld [vmem:[#allocation2 + $0x1d0] sm:$0xf]  ;;  %v2704_v32 = vld [vmem:[#allocation2 + $0x1d4] sm:$0xf0]  ;;  %892 = vmatpush.bf16.msra.mxu1 %v1928_v17  ;;  %v1984_v34 = vor.u32 %v2688_v30, %v1983_v28  ;;  %v2654_v36 = vld [vmem:[#allocation2 + $0x44] sm:$0xf0] }
  0x17   :  { %906 = vmatpush.bf16.msra.mxu2 %v1992_v21  ;;  %v1911_v37 = vld [vmem:[#allocation2 + $0xc0] sm:$0xf]  ;;  %v2048_v38 = vor.u32 %v2704_v32, %v2047_v31  ;;  %v2670_v39 = vld [vmem:[#allocation2 + $0xc4] sm:$0xf0]  ;;  %v1848_v44 = vor.u32 %v2654_v36, %v1847_v35  ;;  %v1839_v47 = vld [vmem:[#allocation2 + $0x30] sm:$0xf] }
  0x18   :  { %920 = vmatpush.bf16.msra.mxu3 %v2056_v25  ;;  %v1975_v40 = vld [vmem:[#allocation2 + $0x140] sm:$0xf]  ;;  %v2686_v41 = vld [vmem:[#allocation2 + $0x144] sm:$0xf0]  ;;  %v1912_v45 = vor.u32 %v2670_v39, %v1911_v37  ;;  %v2652_v48 = vld [vmem:[#allocation2 + $0x34] sm:$0xf0] }
  0x19   :  { %v2039_v42 = vld [vmem:[#allocation2 + $0x1c0] sm:$0xf]  ;;  %v2702_v43 = vld [vmem:[#allocation2 + $0x1c4] sm:$0xf0]  ;;  %879 = vmatpush.bf16.msra.mxu0 %v1856_v29  ;;  %v1976_v46 = vor.u32 %v2686_v41, %v1975_v40  ;;  %v1903_v49 = vld [vmem:[#allocation2 + $0xb0] sm:$0xf]  ;;  %v1840_v56 = vor.u32 %v2652_v48, %v1839_v47 }
  0x1a   :  { %893 = vmatpush.bf16.msra.mxu1 %v1920_v33  ;;  %v2040_v50 = vor.u32 %v2702_v43, %v2039_v42  ;;  %v2668_v51 = vld [vmem:[#allocation2 + $0xb4] sm:$0xf0]  ;;  %v1967_v52 = vld [vmem:[#allocation2 + $0x130] sm:$0xf]  ;;  %v1831_v59 = vld [vmem:[#allocation2 + $0x20] sm:$0xf] }
  0x1b   :  { %907 = vmatpush.bf16.msra.mxu2 %v1984_v34  ;;  %v2684_v53 = vld [vmem:[#allocation2 + $0x134] sm:$0xf0]  ;;  %v2031_v54 = vld [vmem:[#allocation2 + $0x1b0] sm:$0xf]  ;;  %v1904_v57 = vor.u32 %v2668_v51, %v1903_v49  ;;  %v2650_v60 = vld [vmem:[#allocation2 + $0x24] sm:$0xf0] }
  0x1c   :  { %921 = vmatpush.bf16.msra.mxu3 %v2048_v38  ;;  %v2700_v55 = vld [vmem:[#allocation2 + $0x1b4] sm:$0xf0]  ;;  %v1968_v58 = vor.u32 %v2684_v53, %v1967_v52  ;;  %v1895_v61 = vld [vmem:[#allocation2 + $0xa0] sm:$0xf]  ;;  %v2666_v63 = vld [vmem:[#allocation2 + $0xa4] sm:$0xf0]  ;;  %v1832_v4 = vor.u32 %v2650_v60, %v1831_v59 }
  0x1d   :  { %880 = vmatpush.bf16.msra.mxu0 %v1848_v44  ;;  %v2032_v62 = vor.u32 %v2700_v55, %v2031_v54  ;;  %v1959_v0 = vld [vmem:[#allocation2 + $0x120] sm:$0xf]  ;;  %v2682_v1 = vld [vmem:[#allocation2 + $0x124] sm:$0xf0]  ;;  %v1896_v5 = vor.u32 %v2666_v63, %v1895_v61  ;;  %v1823_v7 = vld [vmem:[#allocation2 + $0x10] sm:$0xf] }
  0x1e   :  { %894 = vmatpush.bf16.msra.mxu1 %v1912_v45  ;;  %v2023_v2 = vld [vmem:[#allocation2 + $0x1a0] sm:$0xf]  ;;  %v2698_v3 = vld [vmem:[#allocation2 + $0x1a4] sm:$0xf0]  ;;  %v1960_v6 = vor.u32 %v2682_v1, %v1959_v0  ;;  %v2648_v8 = vld [vmem:[#allocation2 + $0x14] sm:$0xf0] }
  0x1f   :  { %908 = vmatpush.bf16.msra.mxu2 %v1976_v46  ;;  %v1887_v9 = vld [vmem:[#allocation2 + $0x90] sm:$0xf]  ;;  %v2024_v10 = vor.u32 %v2698_v3, %v2023_v2  ;;  %v2664_v11 = vld [vmem:[#allocation2 + $0x94] sm:$0xf0]  ;;  %v1824_v16 = vor.u32 %v2648_v8, %v1823_v7  ;;  %v1815_v17 = vld [vmem:[#allocation2] sm:$0xf] }
  0x20   :  { %922 = vmatpush.bf16.msra.mxu3 %v2040_v50  ;;  %v1951_v12 = vld [vmem:[#allocation2 + $0x110] sm:$0xf]  ;;  %v2680_v13 = vld [vmem:[#allocation2 + $0x114] sm:$0xf0]  ;;  %v2646_v18 = vld [vmem:[#allocation2 + $0x4] sm:$0xf0]  ;;  %v1888_v19 = vor.u32 %v2664_v11, %v1887_v9 }
  0x21   :  { %881 = vmatpush.bf16.msra.mxu0 %v1840_v56  ;;  %v2015_v14 = vld [vmem:[#allocation2 + $0x190] sm:$0xf]  ;;  %v2696_v15 = vld [vmem:[#allocation2 + $0x194] sm:$0xf0]  ;;  %v1952_v20 = vor.u32 %v2680_v13, %v1951_v12  ;;  %v1879_v21 = vld [vmem:[#allocation2 + $0x80] sm:$0xf]  ;;  %v1816_v31 = vor.u32 %v2646_v18, %v1815_v17 }
  0x22   :  { %895 = vmatpush.bf16.msra.mxu1 %v1904_v57  ;;  %v2662_v22 = vld [vmem:[#allocation2 + $0x84] sm:$0xf0]  ;;  %v1943_v23 = vld [vmem:[#allocation2 + $0x100] sm:$0xf]  ;;  %v2016_v24 = vor.u32 %v2696_v15, %v2015_v14  ;;  %v2127_v28 = vld [vmem:[#allocation2 + $0x270] sm:$0xf] }
  0x23   :  { %909 = vmatpush.bf16.msra.mxu2 %v1968_v58  ;;  %v2678_v25 = vld [vmem:[#allocation2 + $0x104] sm:$0xf0]  ;;  %v2007_v26 = vld [vmem:[#allocation2 + $0x180] sm:$0xf]  ;;  %v2724_v29 = vld [vmem:[#allocation2 + $0x274] sm:$0xf0]  ;;  %v1880_v35 = vor.u32 %v2662_v22, %v1879_v21 }
  0x24   :  { %923 = vmatpush.bf16.msra.mxu3 %v2032_v62  ;;  %v2694_v27 = vld [vmem:[#allocation2 + $0x184] sm:$0xf0]  ;;  %v2191_v30 = vld [vmem:[#allocation2 + $0x2f0] sm:$0xf]  ;;  %v2740_v32 = vld [vmem:[#allocation2 + $0x2f4] sm:$0xf0]  ;;  %v1944_v36 = vor.u32 %v2678_v25, %v1943_v23  ;;  %v2128_v40 = vor.u32 %v2724_v29, %v2127_v28 }
  0x25   :  { %882 = vmatpush.bf16.msra.mxu0 %v1832_v4  ;;  %v2255_v33 = vld [vmem:[#allocation2 + $0x370] sm:$0xf]  ;;  %v2756_v34 = vld [vmem:[#allocation2 + $0x374] sm:$0xf0]  ;;  %v2008_v39 = vor.u32 %v2694_v27, %v2007_v26  ;;  %v2119_v41 = vld [vmem:[#allocation2 + $0x260] sm:$0xf]  ;;  %v2192_v43 = vor.u32 %v2740_v32, %v2191_v30 }
  0x26   :  { %896 = vmatpush.bf16.msra.mxu1 %v1896_v5  ;;  %v2319_v37 = vld [vmem:[#allocation2 + $0x3f0] sm:$0xf]  ;;  %v2772_v38 = vld [vmem:[#allocation2 + $0x3f4] sm:$0xf0]  ;;  %v2722_v42 = vld [vmem:[#allocation2 + $0x264] sm:$0xf0]  ;;  %v2256_v44 = vor.u32 %v2756_v34, %v2255_v33 }
  0x27   :  { %910 = vmatpush.bf16.msra.mxu2 %v1960_v6  ;;  %v2183_v45 = vld [vmem:[#allocation2 + $0x2e0] sm:$0xf]  ;;  %v2738_v46 = vld [vmem:[#allocation2 + $0x2e4] sm:$0xf0]  ;;  %v2320_v48 = vor.u32 %v2772_v38, %v2319_v37  ;;  %v81_v54 = vld [vmem:[%s3297_s0 + $0x10] sm:$0xff]  ;;  %v2120_v55 = vor.u32 %v2722_v42, %v2119_v41 }
  0x28   :  { %924 = vmatpush.bf16.msra.mxu3 %v2024_v10  ;;  %v2247_v47 = vld [vmem:[#allocation2 + $0x360] sm:$0xf]  ;;  %v2754_v49 = vld [vmem:[#allocation2 + $0x364] sm:$0xf0]  ;;  %v2111_v56 = vld [vmem:[#allocation2 + $0x250] sm:$0xf]  ;;  %v2184_v60 = vor.u32 %v2738_v46, %v2183_v45 }
  0x29   :  { %883 = vmatpush.bf16.msra.mxu0 %v1824_v16  ;;  %v2311_v50 = vld [vmem:[#allocation2 + $0x3e0] sm:$0xf]  ;;  %v2770_v51 = vld [vmem:[#allocation2 + $0x3e4] sm:$0xf0]  ;;  %v2720_v57 = vld [vmem:[#allocation2 + $0x254] sm:$0xf0]  ;;  %v2248_v61 = vor.u32 %v2754_v49, %v2247_v47 }
  0x2a   :  { %897 = vmatpush.bf16.msra.mxu1 %v1888_v19  ;;  %v79_v52 = vld [vmem:[%s3297_s0] sm:$0xff]  ;;  %v89_v59 = vld [vmem:[%s3297_s0 + $0x50] sm:$0xff]  ;;  %v2736_v63 = vld [vmem:[#allocation2 + $0x2d4] sm:$0xf0]  ;;  %v2312_v2 = vor.u32 %v2770_v51, %v2311_v50  ;;  %v2112_v9 = vor.u32 %v2720_v57, %v2111_v56 }
  0x2b   :  { %911 = vmatpush.bf16.msra.mxu2 %v1952_v20  ;;  %v87_v53 = vld [vmem:[%s3297_s0 + $0x40] sm:$0xff]  ;;  %v2175_v62 = vld [vmem:[#allocation2 + $0x2d0] sm:$0xf]  ;;  %v3017_v1 = vpack.c.bf16 %v89_v59, %v81_v54  ;;  %v2752_v3 = vld [vmem:[#allocation2 + $0x354] sm:$0xf0] }
  0x2c   :  { %925 = vmatpush.bf16.msra.mxu3 %v2016_v24  ;;  %v3012_v58 = vpack.c.bf16 %v87_v53, %v79_v52  ;;  %v2239_v0 = vld [vmem:[#allocation2 + $0x350] sm:$0xf]  ;;  %v2768_v5 = vld [vmem:[#allocation2 + $0x3d4] sm:$0xf0]  ;;  %v80_v6 = vld [vmem:[%s3297_s0 + $0x8] sm:$0xff]  ;;  %v2176_v12 = vor.u32 %v2736_v63, %v2175_v62 }
  0x2d   :  { %884 = vmatpush.bf16.msra.mxu0 %v1816_v31  ;;  %v2303_v4 = vld [vmem:[#allocation2 + $0x3d0] sm:$0xf]  ;;  %v88_v7 = vld [vmem:[%s3297_s0 + $0x48] sm:$0xff]  ;;  %v82_v8 = vld [vmem:[%s3297_s0 + $0x18] sm:$0xff]  ;;  %v2240_v13 = vor.u32 %v2752_v3, %v2239_v0 }
  0x2e   :  { %898 = vmatpush.bf16.msra.mxu1 %v1880_v35  ;;  %v3030_v10 = vpack.c.bf16 %v88_v7, %v80_v6  ;;  %v90_v11 = vld [vmem:[%s3297_s0 + $0x58] sm:$0xff]  ;;  %v2103_v14 = vld [vmem:[#allocation2 + $0x240] sm:$0xf]  ;;  %v2718_v15 = vld [vmem:[#allocation2 + $0x244] sm:$0xf0]  ;;  %v2304_v18 = vor.u32 %v2768_v5, %v2303_v4 }
  0x2f   :  { %912 = vmatpush.bf16.msra.mxu2 %v1944_v36  ;;  %v2167_v16 = vld [vmem:[#allocation2 + $0x2c0] sm:$0xf]  ;;  %v3035_v17 = vpack.c.bf16 %v90_v11, %v82_v8  ;;  %v2734_v19 = vld [vmem:[#allocation2 + $0x2c4] sm:$0xf0]  ;;  %v2104_v24 = vor.u32 %v2718_v15, %v2103_v14  ;;  %v2095_v27 = vld [vmem:[#allocation2 + $0x230] sm:$0xf] }
  0x30   :  { %926 = vmatpush.bf16.msra.mxu3 %v2008_v39  ;;  %885 = vmatmul.bf16.vlgmr.msra.gmra.mxu0 %v3012_v58  ;;  %v2231_v20 = vld [vmem:[#allocation2 + $0x340] sm:$0xf]  ;;  %v2750_v21 = vld [vmem:[#allocation2 + $0x344] sm:$0xf0]  ;;  %v2168_v25 = vor.u32 %v2734_v19, %v2167_v16  ;;  %v2716_v28 = vld [vmem:[#allocation2 + $0x234] sm:$0xf0] }
  0x31   :  { %933 = vmatpush.bf16.msrb.mxu0 %v2128_v40  ;;  %899 = vmatmul.bf16.vlgmr.msra.gmra.mxu1 %v3030_v10  ;;  %v2295_v22 = vld [vmem:[#allocation2 + $0x3c0] sm:$0xf]  ;;  %v2766_v23 = vld [vmem:[#allocation2 + $0x3c4] sm:$0xf0]  ;;  %v2232_v26 = vor.u32 %v2750_v21, %v2231_v20  ;;  %v2159_v29 = vld [vmem:[#allocation2 + $0x2b0] sm:$0xf]  ;;  %v2096_v36 = vor.u32 %v2716_v28, %v2095_v27 }
  0x32   :  { %947 = vmatpush.bf16.msrb.mxu1 %v2192_v43  ;;  %913 = vmatmul.bf16.vlgmr.msra.gmra.mxu2 %v3017_v1  ;;  %v2296_v30 = vor.u32 %v2766_v23, %v2295_v22  ;;  %v2732_v31 = vld [vmem:[#allocation2 + $0x2b4] sm:$0xf0]  ;;  %v2223_v32 = vld [vmem:[#allocation2 + $0x330] sm:$0xf]  ;;  %v2087_v39 = vld [vmem:[#allocation2 + $0x220] sm:$0xf] }
  0x33   :  { %961 = vmatpush.bf16.msrb.mxu2 %v2256_v44  ;;  %927 = vmatmul.bf16.vlgmr.msra.gmra.mxu3 %v3035_v17  ;;  %v2748_v33 = vld [vmem:[#allocation2 + $0x334] sm:$0xf0]  ;;  %v2287_v34 = vld [vmem:[#allocation2 + $0x3b0] sm:$0xf]  ;;  %v2160_v37 = vor.u32 %v2732_v31, %v2159_v29  ;;  %v2714_v40 = vld [vmem:[#allocation2 + $0x224] sm:$0xf0] }
  0x34   :  { %975 = vmatpush.bf16.msrb.mxu3 %v2320_v48  ;;  %v2764_v35 = vld [vmem:[#allocation2 + $0x3b4] sm:$0xf0]  ;;  %v2224_v38 = vor.u32 %v2748_v33, %v2223_v32  ;;  %v2151_v41 = vld [vmem:[#allocation2 + $0x2a0] sm:$0xf]  ;;  %v2730_v43 = vld [vmem:[#allocation2 + $0x2a4] sm:$0xf0]  ;;  %v2088_v48 = vor.u32 %v2714_v40, %v2087_v39 }
  0x35   :  { %934 = vmatpush.bf16.msrb.mxu0 %v2120_v55  ;;  %v2288_v42 = vor.u32 %v2764_v35, %v2287_v34  ;;  %v2215_v44 = vld [vmem:[#allocation2 + $0x320] sm:$0xf]  ;;  %v2746_v45 = vld [vmem:[#allocation2 + $0x324] sm:$0xf0]  ;;  %v2079_v49 = vld [vmem:[#allocation2 + $0x210] sm:$0xf]  ;;  %v2152_v50 = vor.u32 %v2730_v43, %v2151_v41 }
  0x36   :  { %948 = vmatpush.bf16.msrb.mxu1 %v2184_v60  ;;  %v2279_v46 = vld [vmem:[#allocation2 + $0x3a0] sm:$0xf]  ;;  %v2762_v47 = vld [vmem:[#allocation2 + $0x3a4] sm:$0xf0]  ;;  %v2216_v51 = vor.u32 %v2746_v45, %v2215_v44  ;;  %v2712_v52 = vld [vmem:[#allocation2 + $0x214] sm:$0xf0] }
  0x37   :  { %962 = vmatpush.bf16.msrb.mxu2 %v2248_v61  ;;  %v2143_v53 = vld [vmem:[#allocation2 + $0x290] sm:$0xf]  ;;  %v2728_v54 = vld [vmem:[#allocation2 + $0x294] sm:$0xf0]  ;;  %v2280_v55 = vor.u32 %v2762_v47, %v2279_v46  ;;  %v2071_v61 = vld [vmem:[#allocation2 + $0x200] sm:$0xf]  ;;  %v2080_v63 = vor.u32 %v2712_v52, %v2079_v49 }
  0x38   :  { %976 = vmatpush.bf16.msrb.mxu3 %v2312_v2  ;;  %v2207_v56 = vld [vmem:[#allocation2 + $0x310] sm:$0xf]  ;;  %v2744_v57 = vld [vmem:[#allocation2 + $0x314] sm:$0xf0]  ;;  %v2710_v62 = vld [vmem:[#allocation2 + $0x204] sm:$0xf0]  ;;  %v2144_v5 = vor.u32 %v2728_v54, %v2143_v53 }
  0x39   :  { %935 = vmatpush.bf16.msrb.mxu0 %v2112_v9  ;;  %v2271_v59 = vld [vmem:[#allocation2 + $0x390] sm:$0xf]  ;;  %v2760_v60 = vld [vmem:[#allocation2 + $0x394] sm:$0xf0]  ;;  %v2135_v0 = vld [vmem:[#allocation2 + $0x280] sm:$0xf]  ;;  %v2208_v6 = vor.u32 %v2744_v57, %v2207_v56  ;;  %v2072_v19 = vor.u32 %v2710_v62, %v2071_v61 }
  0x3a   :  { %949 = vmatpush.bf16.msrb.mxu1 %v2176_v12  ;;  %v2726_v2 = vld [vmem:[#allocation2 + $0x284] sm:$0xf0]  ;;  %v2199_v3 = vld [vmem:[#allocation2 + $0x300] sm:$0xf]  ;;  %v2659_v9 = vld [vmem:[#allocation2 + $0x74] sm:$0xf]  ;;  %v2272_v11 = vor.u32 %v2760_v60, %v2271_v59 }
  0x3b   :  { %963 = vmatpush.bf16.msrb.mxu2 %v2240_v13  ;;  %v2742_v4 = vld [vmem:[#allocation2 + $0x304] sm:$0xf0]  ;;  %v2263_v7 = vld [vmem:[#allocation2 + $0x380] sm:$0xf]  ;;  %v1873_v12 = vld [vmem:[#allocation2 + $0x78] sm:$0xf0]  ;;  %v2136_v23 = vor.u32 %v2726_v2, %v2135_v0 }
  0x3c   :  { %977 = vmatpush.bf16.msrb.mxu3 %v2304_v18  ;;  %v2758_v8 = vld [vmem:[#allocation2 + $0x384] sm:$0xf0]  ;;  %v2675_v13 = vld [vmem:[#allocation2 + $0xf4] sm:$0xf]  ;;  %v1937_v14 = vld [vmem:[#allocation2 + $0xf8] sm:$0xf0]  ;;  %v1876_v29 = vor.u32 %v2659_v9, %v1873_v12 }
  0x3d   :  { %936 = vmatpush.bf16.msrb.mxu0 %v2104_v24  ;;  %v2691_v15 = vld [vmem:[#allocation2 + $0x174] sm:$0xf]  ;;  %v2001_v16 = vld [vmem:[#allocation2 + $0x178] sm:$0xf0]  ;;  %v83_v21 = vld [vmem:[%s3297_s0 + $0x20] sm:$0xff]  ;;  %v2200_v24 = vor.u32 %v2742_v4, %v2199_v3  ;;  %v2264_v28 = vor.u32 %v2758_v8, %v2263_v7  ;;  %v1940_v33 = vor.u32 %v2675_v13, %v1937_v14 }
  0x3e   :  { %950 = vmatpush.bf16.msrb.mxu1 %v2168_v25  ;;  %v2707_v18 = vld [vmem:[#allocation2 + $0x1f4] sm:$0xf]  ;;  %v2065_v20 = vld [vmem:[#allocation2 + $0x1f8] sm:$0xf0]  ;;  %v91_v22 = vld [vmem:[%s3297_s0 + $0x60] sm:$0xff]  ;;  %v2004_v34 = vor.u32 %v2691_v15, %v2001_v16 }
  0x3f   :  { %964 = vmatpush.bf16.msrb.mxu2 %v2232_v26  ;;  %v85_v25 = vld [vmem:[%s3297_s0 + $0x30] sm:$0xff]  ;;  %v84_v27 = vld [vmem:[%s3297_s0 + $0x28] sm:$0xff]  ;;  %v86_v31 = vld [vmem:[%s3297_s0 + $0x38] sm:$0xff]  ;;  %v3063_v39 = vpack.c.bf16 %v91_v22, %v83_v21 }
  0x40   :  { %978 = vmatpush.bf16.msrb.mxu3 %v2296_v30  ;;  %v93_v26 = vld [vmem:[%s3297_s0 + $0x70] sm:$0xff]  ;;  %v92_v30 = vld [vmem:[%s3297_s0 + $0x68] sm:$0xff]  ;;  %v94_v32 = vld [vmem:[%s3297_s0 + $0x78] sm:$0xff] }
  0x41   :  { %937 = vmatpush.bf16.msrb.mxu0 %v2096_v36  ;;  %v2657_v35 = vld [vmem:[#allocation2 + $0x64] sm:$0xf]  ;;  %v1865_v36 = vld [vmem:[#allocation2 + $0x68] sm:$0xf0]  ;;  %v3065_v43 = vpack.c.bf16 %v93_v26, %v85_v25  ;;  %v3067_v44 = vpack.c.bf16 %v92_v30, %v84_v27  ;;  %v3069_v47 = vpack.c.bf16 %v94_v32, %v86_v31  ;;  %v1857_v52 = vld [vmem:[#allocation2 + $0x58] sm:$0xf0] }
  0x42   :  { %951 = vmatpush.bf16.msrb.mxu1 %v2160_v37  ;;  %v2673_v37 = vld [vmem:[#allocation2 + $0xe4] sm:$0xf]  ;;  %v1929_v40 = vld [vmem:[#allocation2 + $0xe8] sm:$0xf0]  ;;  %v2671_v53 = vld [vmem:[#allocation2 + $0xd4] sm:$0xf] }
  0x43   :  { %965 = vmatpush.bf16.msrb.mxu2 %v2224_v38  ;;  %v2068_v38 = vor.u32 %v2707_v18, %v2065_v20  ;;  %v2689_v41 = vld [vmem:[#allocation2 + $0x164] sm:$0xf]  ;;  %v2057_v46 = vld [vmem:[#allocation2 + $0x1e8] sm:$0xf0]  ;;  %v1932_v49 = vor.u32 %v2673_v37, %v1929_v40  ;;  %v2687_v56 = vld [vmem:[#allocation2 + $0x154] sm:$0xf] }
  0x44   :  { %979 = vmatpush.bf16.msrb.mxu3 %v2288_v42  ;;  %v1993_v42 = vld [vmem:[#allocation2 + $0x168] sm:$0xf0]  ;;  %v2705_v45 = vld [vmem:[#allocation2 + $0x1e4] sm:$0xf]  ;;  %v1985_v57 = vld [vmem:[#allocation2 + $0x158] sm:$0xf0] }
  0x45   :  { %938 = vmatpush.bf16.msrb.mxu0 %v2088_v48  ;;  %v1868_v48 = vor.u32 %v2657_v35, %v1865_v36  ;;  %v2060_v54 = vor.u32 %v2705_v45, %v2057_v46  ;;  %v2703_v59 = vld [vmem:[#allocation2 + $0x1d4] sm:$0xf]  ;;  %v2049_v60 = vld [vmem:[#allocation2 + $0x1d8] sm:$0xf0]  ;;  %v2653_v0 = vld [vmem:[#allocation2 + $0x44] sm:$0xf] }
  0x46   :  { %952 = vmatpush.bf16.msrb.mxu1 %v2152_v50  ;;  %v1996_v50 = vor.u32 %v2689_v41, %v1993_v42  ;;  %v1849_v2 = vld [vmem:[#allocation2 + $0x48] sm:$0xf0]  ;;  %v2669_v3 = vld [vmem:[#allocation2 + $0xc4] sm:$0xf]  ;;  %v2052_v4 = vor.u32 %v2703_v59, %v2049_v60  ;;  %v2651_v14 = vld [vmem:[#allocation2 + $0x34] sm:$0xf] }
  0x47   :  { %966 = vmatpush.bf16.msrb.mxu2 %v2216_v51  ;;  %v2655_v51 = vld [vmem:[#allocation2 + $0x54] sm:$0xf]  ;;  %v1977_v7 = vld [vmem:[#allocation2 + $0x148] sm:$0xf0]  ;;  %v2701_v8 = vld [vmem:[#allocation2 + $0x1c4] sm:$0xf] }
  0x48   :  { %980 = vmatpush.bf16.msrb.mxu3 %v2280_v55  ;;  %v1921_v55 = vld [vmem:[#allocation2 + $0xd8] sm:$0xf0]  ;;  %v1860_v61 = vor.u32 %v2655_v51, %v1857_v52  ;;  %v2041_v9 = vld [vmem:[#allocation2 + $0x1c8] sm:$0xf0]  ;;  %v2667_v16 = vld [vmem:[#allocation2 + $0xb4] sm:$0xf] }
  0x49   :  { %939 = vmatpush.bf16.msrb.mxu0 %v2080_v63  ;;  %v1924_v62 = vor.u32 %v2671_v53, %v1921_v55  ;;  %v1988_v63 = vor.u32 %v2687_v56, %v1985_v57  ;;  %v1841_v15 = vld [vmem:[#allocation2 + $0x38] sm:$0xf0]  ;;  %v2044_v18 = vor.u32 %v2701_v8, %v2041_v9  ;;  %v2683_v20 = vld [vmem:[#allocation2 + $0x134] sm:$0xf]  ;;  %v2649_v27 = vld [vmem:[#allocation2 + $0x24] sm:$0xf] }
  0x4a   :  { %953 = vmatpush.bf16.msrb.mxu1 %v2144_v5  ;;  %v1913_v5 = vld [vmem:[#allocation2 + $0xc8] sm:$0xf0]  ;;  %v1969_v21 = vld [vmem:[#allocation2 + $0x138] sm:$0xf0]  ;;  %v2699_v22 = vld [vmem:[#allocation2 + $0x1b4] sm:$0xf] }
  0x4b   :  { %967 = vmatpush.bf16.msrb.mxu2 %v2208_v6  ;;  %v2685_v6 = vld [vmem:[#allocation2 + $0x144] sm:$0xf]  ;;  %v1916_v12 = vor.u32 %v2669_v3, %v1913_v5  ;;  %v1972_v26 = vor.u32 %v2683_v20, %v1969_v21  ;;  %v1897_v31 = vld [vmem:[#allocation2 + $0xa8] sm:$0xf0]  ;;  %v2647_v40 = vld [vmem:[#allocation2 + $0x14] sm:$0xf] }
  0x4c   :  { %981 = vmatpush.bf16.msrb.mxu3 %v2272_v11  ;;  %v1852_v11 = vor.u32 %v2653_v0, %v1849_v2  ;;  %v1980_v13 = vor.u32 %v2685_v6, %v1977_v7  ;;  %v2681_v32 = vld [vmem:[#allocation2 + $0x124] sm:$0xf]  ;;  %v2025_v35 = vld [vmem:[#allocation2 + $0x1a8] sm:$0xf0]  ;;  %v1825_v41 = vld [vmem:[#allocation2 + $0x18] sm:$0xf0] }
  0x4d   :  { %940 = vmatpush.bf16.msrb.mxu0 %v2072_v19  ;;  %v1905_v19 = vld [vmem:[#allocation2 + $0xb8] sm:$0xf0]  ;;  %v2663_v42 = vld [vmem:[#allocation2 + $0x94] sm:$0xf]  ;;  %v1828_v52 = vor.u32 %v2647_v40, %v1825_v41  ;;  %v2645_v53 = vld [vmem:[#allocation2 + $0x4] sm:$0xf] }
  0x4e   :  { %954 = vmatpush.bf16.msrb.mxu1 %v2136_v23  ;;  %v2033_v23 = vld [vmem:[#allocation2 + $0x1b8] sm:$0xf0]  ;;  %v1908_v25 = vor.u32 %v2667_v16, %v1905_v19  ;;  %v2661_v57 = vld [vmem:[#allocation2 + $0x84] sm:$0xf]  ;;  %v1881_v59 = vld [vmem:[#allocation2 + $0x88] sm:$0xf0] }
  0x4f   :  { %968 = vmatpush.bf16.msrb.mxu2 %v2200_v24  ;;  %v1844_v24 = vor.u32 %v2651_v14, %v1841_v15  ;;  %v2036_v30 = vor.u32 %v2699_v22, %v2033_v23  ;;  %v1889_v46 = vld [vmem:[#allocation2 + $0x98] sm:$0xf0]  ;;  %v2677_v60 = vld [vmem:[#allocation2 + $0x104] sm:$0xf]  ;;  %v2009_v0 = vld [vmem:[#allocation2 + $0x188] sm:$0xf0]  ;;  %v1884_v9 = vor.u32 %v2661_v57, %v1881_v59 }
  0x50   :  { %982 = vmatpush.bf16.msrb.mxu3 %v2264_v28  ;;  %941 = vmatmul.bf16.vlgmr.msrb.gmra.mxu0 %v3063_v39  ;;  %v1833_v28 = vld [vmem:[#allocation2 + $0x28] sm:$0xf0]  ;;  %v2017_v51 = vld [vmem:[#allocation2 + $0x198] sm:$0xf0]  ;;  %v1892_v55 = vor.u32 %v2663_v42, %v1889_v46  ;;  %v2723_v2 = vld [vmem:[#allocation2 + $0x274] sm:$0xf] }
  0x51   :  { %989 = vmatpush.bf16.msra.mxu0 %v1876_v29  ;;  %955 = vmatmul.bf16.vlgmr.msrb.gmra.mxu1 %v3067_v44  ;;  %v2665_v29 = vld [vmem:[#allocation2 + $0xa4] sm:$0xf]  ;;  %v1836_v36 = vor.u32 %v2649_v27, %v1833_v28  ;;  %v2129_v3 = vld [vmem:[#allocation2 + $0x278] sm:$0xf0]  ;;  %v2755_v7 = vld [vmem:[#allocation2 + $0x374] sm:$0xf] }
  0x52   :  { %1003 = vmatpush.bf16.msra.mxu1 %v1940_v33  ;;  %969 = vmatmul.bf16.vlgmr.msrb.gmra.mxu2 %v3065_v43  ;;  %v1961_v33 = vld [vmem:[#allocation2 + $0x128] sm:$0xf0]  ;;  %v1900_v37 = vor.u32 %v2665_v29, %v1897_v31  ;;  %v2193_v6 = vld [vmem:[#allocation2 + $0x2f8] sm:$0xf0]  ;;  %v2132_v15 = vor.u32 %v2723_v2, %v2129_v3  ;;  %v2721_v16 = vld [vmem:[#allocation2 + $0x264] sm:$0xf] }
  0x53   :  { %1017 = vmatpush.bf16.msra.mxu2 %v2004_v34  ;;  %983 = vmatmul.bf16.vlgmr.msrb.gmra.mxu3 %v3069_v47  ;;  %v2697_v34 = vld [vmem:[#allocation2 + $0x1a4] sm:$0xf]  ;;  %v2257_v8 = vld [vmem:[#allocation2 + $0x378] sm:$0xf0]  ;;  %v2121_v20 = vld [vmem:[#allocation2 + $0x268] sm:$0xf0] }
  0x54   :  { %1031 = vmatpush.bf16.msra.mxu3 %v2068_v38  ;;  %v1964_v38 = vor.u32 %v2681_v32, %v1961_v33  ;;  %v2028_v45 = vor.u32 %v2697_v34, %v2025_v35  ;;  %v2260_v19 = vor.u32 %v2755_v7, %v2257_v8  ;;  %v2737_v21 = vld [vmem:[#allocation2 + $0x2e4] sm:$0xf]  ;;  %v2185_v23 = vld [vmem:[#allocation2 + $0x2e8] sm:$0xf0]  ;;  %v2124_v28 = vor.u32 %v2721_v16, %v2121_v20  ;;  %v2719_v31 = vld [vmem:[#allocation2 + $0x254] sm:$0xf] }
  0x55   :  { %990 = vmatpush.bf16.msra.mxu0 %v1868_v48  ;;  %v2679_v48 = vld [vmem:[#allocation2 + $0x114] sm:$0xf]  ;;  %v2313_v27 = vld [vmem:[#allocation2 + $0x3e8] sm:$0xf0]  ;;  %v2188_v29 = vor.u32 %v2737_v21, %v2185_v23  ;;  %v2113_v32 = vld [vmem:[#allocation2 + $0x258] sm:$0xf0] }
  0x56   :  { %1004 = vmatpush.bf16.msra.mxu1 %v1932_v49  ;;  %v1953_v49 = vld [vmem:[#allocation2 + $0x118] sm:$0xf0]  ;;  %v2735_v33 = vld [vmem:[#allocation2 + $0x2d4] sm:$0xf]  ;;  %v2116_v41 = vor.u32 %v2719_v31, %v2113_v32  ;;  %v2717_v46 = vld [vmem:[#allocation2 + $0x244] sm:$0xf] }
  0x57   :  { %1018 = vmatpush.bf16.msra.mxu2 %v1996_v50  ;;  %v2695_v50 = vld [vmem:[#allocation2 + $0x194] sm:$0xf]  ;;  %v1956_v56 = vor.u32 %v2679_v48, %v1953_v49  ;;  %v2177_v35 = vld [vmem:[#allocation2 + $0x2d8] sm:$0xf0]  ;;  %v2105_v48 = vld [vmem:[#allocation2 + $0x248] sm:$0xf0] }
  0x58   :  { %1032 = vmatpush.bf16.msra.mxu3 %v2060_v54  ;;  %v1817_v54 = vld [vmem:[#allocation2 + $0x8] sm:$0xf0]  ;;  %v2305_v40 = vld [vmem:[#allocation2 + $0x3d8] sm:$0xf0]  ;;  %v2180_v42 = vor.u32 %v2735_v33, %v2177_v35  ;;  %v2731_v57 = vld [vmem:[#allocation2 + $0x2b4] sm:$0xf] }
  0x59   :  { %991 = vmatpush.bf16.msra.mxu0 %v1860_v61  ;;  %v2020_v61 = vor.u32 %v2695_v50, %v2017_v51  ;;  %v1820_v5 = vor.u32 %v2645_v53, %v1817_v54  ;;  %v2169_v50 = vld [vmem:[#allocation2 + $0x2c8] sm:$0xf0]  ;;  %v2749_v51 = vld [vmem:[#allocation2 + $0x344] sm:$0xf]  ;;  %v2081_v20 = vld [vmem:[#allocation2 + $0x218] sm:$0xf0] }
  0x5a   :  { %1005 = vmatpush.bf16.msra.mxu1 %v1924_v62  ;;  %v1945_v62 = vld [vmem:[#allocation2 + $0x108] sm:$0xf0]  ;;  %v2765_v53 = vld [vmem:[#allocation2 + $0x3c4] sm:$0xf]  ;;  %v2727_v21 = vld [vmem:[#allocation2 + $0x294] sm:$0xf] }
  0x5b   :  { %1019 = vmatpush.bf16.msra.mxu2 %v1988_v63  ;;  %v2693_v63 = vld [vmem:[#allocation2 + $0x184] sm:$0xf]  ;;  %v2145_v23 = vld [vmem:[#allocation2 + $0x298] sm:$0xf0]  ;;  %v2073_v32 = vld [vmem:[#allocation2 + $0x208] sm:$0xf0] }
  0x5c   :  { %1033 = vmatpush.bf16.msra.mxu3 %v2052_v4  ;;  %v2739_v4 = vld [vmem:[#allocation2 + $0x2f4] sm:$0xf]  ;;  %v2012_v14 = vor.u32 %v2693_v63, %v2009_v0  ;;  %v2289_v0 = vld [vmem:[#allocation2 + $0x3b8] sm:$0xf0]  ;;  %v2729_v7 = vld [vmem:[#allocation2 + $0x2a4] sm:$0xf] }
  0x5d   :  { %992 = vmatpush.bf16.msra.mxu0 %v1852_v11  ;;  %v1948_v11 = vor.u32 %v2677_v60, %v1945_v62  ;;  %v2161_v60 = vld [vmem:[#allocation2 + $0x2b8] sm:$0xf0]  ;;  %v2763_v63 = vld [vmem:[#allocation2 + $0x3b4] sm:$0xf]  ;;  %v2709_v31 = vld [vmem:[#allocation2 + $0x204] sm:$0xf] }
  0x5e   :  { %1006 = vmatpush.bf16.msra.mxu1 %v1916_v12  ;;  %v2771_v12 = vld [vmem:[#allocation2 + $0x3f4] sm:$0xf]  ;;  %v2225_v62 = vld [vmem:[#allocation2 + $0x338] sm:$0xf0]  ;;  %v2164_v3 = vor.u32 %v2731_v57, %v2161_v60  ;;  %v2292_v8 = vor.u32 %v2763_v63, %v2289_v0  ;;  %v2725_v33 = vld [vmem:[#allocation2 + $0x284] sm:$0xf] }
  0x5f   :  { %1020 = vmatpush.bf16.msra.mxu2 %v1980_v13  ;;  %v2321_v13 = vld [vmem:[#allocation2 + $0x3f8] sm:$0xf0]  ;;  %v2137_v35 = vld [vmem:[#allocation2 + $0x288] sm:$0xf0]  ;;  %v2782_v60 = vld [vmem:[%s3300_s3 + $0x44] sm:$0xf0] }
  0x60   :  { %1034 = vmatpush.bf16.msra.mxu3 %v2044_v18  ;;  %v2196_v18 = vor.u32 %v2739_v4, %v2193_v6  ;;  %v2324_v22 = vor.u32 %v2771_v12, %v2321_v13  ;;  %v2089_v6 = vld [vmem:[#allocation2 + $0x228] sm:$0xf0]  ;;  %v2761_v13 = vld [vmem:[#allocation2 + $0x3a4] sm:$0xf] }
  0x61   :  { %993 = vmatpush.bf16.msra.mxu0 %v1844_v24  ;;  %v2753_v24 = vld [vmem:[#allocation2 + $0x364] sm:$0xf]  ;;  %v2217_v12 = vld [vmem:[#allocation2 + $0x328] sm:$0xf0] }
  0x62   :  { %1007 = vmatpush.bf16.msra.mxu1 %v1908_v25  ;;  %v2249_v25 = vld [vmem:[#allocation2 + $0x368] sm:$0xf0] }
  0x63   :  { %1021 = vmatpush.bf16.msra.mxu2 %v1972_v26  ;;  %v2769_v26 = vld [vmem:[#allocation2 + $0x3e4] sm:$0xf]  ;;  %v2361_v63 = vld [vmem:[%s3300_s3 + $0x48] sm:$0xf0] }
  0x64   :  { %1035 = vmatpush.bf16.msra.mxu3 %v2036_v30  ;;  %v2252_v30 = vor.u32 %v2753_v24, %v2249_v25  ;;  %v2316_v34 = vor.u32 %v2769_v26, %v2313_v27  ;;  %v2743_v24 = vld [vmem:[#allocation2 + $0x314] sm:$0xf]  ;;  %v2209_v25 = vld [vmem:[#allocation2 + $0x318] sm:$0xf0] }
  0x65   :  { %994 = vmatpush.bf16.msra.mxu0 %v1836_v36  ;;  %v2751_v36 = vld [vmem:[#allocation2 + $0x354] sm:$0xf]  ;;  %v2273_v27 = vld [vmem:[#allocation2 + $0x398] sm:$0xf0] }
  0x66   :  { %1008 = vmatpush.bf16.msra.mxu1 %v1900_v37  ;;  %v2241_v37 = vld [vmem:[#allocation2 + $0x358] sm:$0xf0]  ;;  %v2759_v26 = vld [vmem:[#allocation2 + $0x394] sm:$0xf] }
  0x67   :  { %1022 = vmatpush.bf16.msra.mxu2 %v1964_v38  ;;  %v2767_v38 = vld [vmem:[#allocation2 + $0x3d4] sm:$0xf] }
  0x68   :  { %1036 = vmatpush.bf16.msra.mxu3 %v2028_v45  ;;  %v2244_v45 = vor.u32 %v2751_v36, %v2241_v37  ;;  %v2308_v49 = vor.u32 %v2767_v38, %v2305_v40  ;;  %v2741_v36 = vld [vmem:[#allocation2 + $0x304] sm:$0xf]  ;;  %v2201_v37 = vld [vmem:[#allocation2 + $0x308] sm:$0xf0] }
  0x69   :  { %995 = vmatpush.bf16.msra.mxu0 %v1828_v52  ;;  %v2233_v52 = vld [vmem:[#allocation2 + $0x348] sm:$0xf0]  ;;  %v2757_v38 = vld [vmem:[#allocation2 + $0x384] sm:$0xf] }
  0x6a   :  { %1009 = vmatpush.bf16.msra.mxu1 %v1892_v55  ;;  %v2715_v55 = vld [vmem:[#allocation2 + $0x234] sm:$0xf]  ;;  %v2265_v40 = vld [vmem:[#allocation2 + $0x388] sm:$0xf0] }
  0x6b   :  { %1023 = vmatpush.bf16.msra.mxu2 %v1956_v56  ;;  %v2097_v56 = vld [vmem:[#allocation2 + $0x238] sm:$0xf0] }
  0x6c   :  { %1037 = vmatpush.bf16.msra.mxu3 %v2020_v61  ;;  %v2747_v61 = vld [vmem:[#allocation2 + $0x334] sm:$0xf]  ;;  %v2100_v2 = vor.u32 %v2715_v55, %v2097_v56  ;;  %v2369_v56 = vld [vmem:[%s3300_s3 + $0x58] sm:$0xf0] }
  0x6d   :  { %996 = vmatpush.bf16.msra.mxu0 %v1820_v5  ;;  %v2228_v4 = vor.u32 %v2747_v61, %v2225_v62  ;;  %v2713_v5 = vld [vmem:[#allocation2 + $0x224] sm:$0xf] }
  0x6e   :  { %1010 = vmatpush.bf16.msra.mxu1 %v1884_v9  ;;  %v2153_v9 = vld [vmem:[#allocation2 + $0x2a8] sm:$0xf0]  ;;  %v2781_v61 = vld [vmem:[%s3300_s3 + $0x44] sm:$0xf] }
  0x6f   :  { %1024 = vmatpush.bf16.msra.mxu2 %v1948_v11  ;;  %v2745_v11 = vld [vmem:[#allocation2 + $0x324] sm:$0xf]  ;;  %v2156_v16 = vor.u32 %v2729_v7, %v2153_v9  ;;  %v2364_v0 = vor.u32 %v2781_v61, %v2361_v63  ;;  %v2439_v63 = vld [vmem:[%s3300_s3 + $0xe0] sm:$0xf] }
  0x70   :  { %1038 = vmatpush.bf16.msra.mxu3 %v2012_v14  ;;  %997 = vmatmul.bf16.vlgmr.msra.gmra.mxu0 %v3012_v58  ;;  %v2297_v58 = vld [vmem:[#allocation2 + $0x3c8] sm:$0xf0] }
  0x71   :  { %1045 = vmatpush.bf16.msrb.mxu0 %v2132_v15  ;;  %1011 = vmatmul.bf16.vlgmr.msra.gmra.mxu1 %v3030_v10  ;;  %v2236_v10 = vor.u32 %v2749_v51, %v2233_v52  ;;  %v2300_v59 = vor.u32 %v2765_v53, %v2297_v58  ;;  %v2281_v14 = vld [vmem:[#allocation2 + $0x3a8] sm:$0xf0]  ;;  %v2092_v15 = vor.u32 %v2713_v5, %v2089_v6  ;;  %v2785_v51 = vld [vmem:[%s3300_s3 + $0x64] sm:$0xf]  ;;  %v2353_v6 = vld [vmem:[%s3300_s3 + $0x38] sm:$0xf0] }
  0x72   :  { %1059 = vmatpush.bf16.msrb.mxu1 %v2196_v18  ;;  %1025 = vmatmul.bf16.vlgmr.msra.gmra.mxu2 %v3017_v1  ;;  %v2733_v1 = vld [vmem:[#allocation2 + $0x2c4] sm:$0xf]  ;;  %v2220_v18 = vor.u32 %v2745_v11, %v2217_v12  ;;  %v2377_v52 = vld [vmem:[%s3300_s3 + $0x68] sm:$0xf0]  ;;  %v2343_v11 = vld [vmem:[%s3300_s3 + $0x20] sm:$0xf] }
  0x73   :  { %1073 = vmatpush.bf16.msrb.mxu2 %v2260_v19  ;;  %1039 = vmatmul.bf16.vlgmr.msra.gmra.mxu3 %v3035_v17  ;;  %v2108_v17 = vor.u32 %v2717_v46, %v2105_v48  ;;  %v2172_v54 = vor.u32 %v2733_v1, %v2169_v50  ;;  %v2711_v19 = vld [vmem:[#allocation2 + $0x214] sm:$0xf]  ;;  %v2268_v46 = vor.u32 %v2757_v38, %v2265_v40  ;;  %v2383_v48 = vld [vmem:[%s3300_s3 + $0x70] sm:$0xf]  ;;  %v2788_v1 = vld [vmem:[%s3300_s3 + $0x74] sm:$0xf0] }
  0x74   :  { %1087 = vmatpush.bf16.msrb.mxu3 %v2324_v22  ;;  %v2284_v22 = vor.u32 %v2761_v13, %v2281_v14  ;;  %v2384_v50 = vor.u32 %v2788_v1, %v2383_v48  ;;  %v2380_v58 = vor.u32 %v2785_v51, %v2377_v52  ;;  %v2778_v12 = vld [vmem:[%s3300_s3 + $0x24] sm:$0xf0]  ;;  %v2777_v13 = vld [vmem:[%s3300_s3 + $0x24] sm:$0xf] }
  0x75   :  { %1046 = vmatpush.bf16.msrb.mxu0 %v2124_v28  ;;  %v2084_v28 = vor.u32 %v2711_v19, %v2081_v20  ;;  %v2335_v20 = vld [vmem:[%s3300_s3 + $0x10] sm:$0xf] }
  0x76   :  { %1060 = vmatpush.bf16.msrb.mxu1 %v2188_v29  ;;  %v2148_v29 = vor.u32 %v2727_v21, %v2145_v23  ;;  %v2776_v21 = vld [vmem:[%s3300_s3 + $0x14] sm:$0xf0] }
  0x77   :  { %1074 = vmatpush.bf16.msrb.mxu2 %v2252_v30  ;;  %v2212_v30 = vor.u32 %v2743_v24, %v2209_v25  ;;  %v2336_v23 = vor.u32 %v2776_v21, %v2335_v20  ;;  %v2337_v24 = vld [vmem:[%s3300_s3 + $0x18] sm:$0xf0]  ;;  %v2423_v20 = vld [vmem:[%s3300_s3 + $0xc0] sm:$0xf]  ;;  %v2798_v21 = vld [vmem:[%s3300_s3 + $0xc4] sm:$0xf0] }
  0x78   :  { %1088 = vmatpush.bf16.msrb.mxu3 %v2316_v34  ;;  %v2276_v34 = vor.u32 %v2759_v26, %v2273_v27 }
  0x79   :  { %1047 = vmatpush.bf16.msrb.mxu0 %v2116_v41  ;;  %v2076_v41 = vor.u32 %v2709_v31, %v2073_v32  ;;  %v2773_v31 = vld [vmem:[%s3300_s3 + $0x4] sm:$0xf] }
  0x7a   :  { %1061 = vmatpush.bf16.msrb.mxu1 %v2180_v42  ;;  %v2140_v42 = vor.u32 %v2725_v33, %v2137_v35  ;;  %v2329_v33 = vld [vmem:[%s3300_s3 + $0x8] sm:$0xf0] }
  0x7b   :  { %1075 = vmatpush.bf16.msrb.mxu2 %v2244_v45  ;;  %v2204_v45 = vor.u32 %v2741_v36, %v2201_v37  ;;  %v2332_v35 = vor.u32 %v2773_v31, %v2329_v33  ;;  %v2794_v33 = vld [vmem:[%s3300_s3 + $0xa4] sm:$0xf0] }
  0x7c   :  { %1089 = vmatpush.bf16.msrb.mxu3 %v2308_v49  ;;  %v2787_v49 = vld [vmem:[%s3300_s3 + $0x74] sm:$0xf] }
  0x7d   :  { %1048 = vmatpush.bf16.msrb.mxu0 %v2108_v17  ;;  %v2367_v17 = vld [vmem:[%s3300_s3 + $0x50] sm:$0xf] }
  0x7e   :  { %1062 = vmatpush.bf16.msrb.mxu1 %v2172_v54  ;;  %v2784_v54 = vld [vmem:[%s3300_s3 + $0x54] sm:$0xf0] }
  0x7f   :  { %1076 = vmatpush.bf16.msrb.mxu2 %v2236_v10  ;;  %v2783_v10 = vld [vmem:[%s3300_s3 + $0x54] sm:$0xf]  ;;  %v2368_v55 = vor.u32 %v2784_v54, %v2367_v17 }
  0x80   :  { %1090 = vmatpush.bf16.msrb.mxu3 %v2300_v59  ;;  %v2372_v57 = vor.u32 %v2783_v10, %v2369_v56  ;;  %v2359_v59 = vld [vmem:[%s3300_s3 + $0x40] sm:$0xf]  ;;  %v2447_v10 = vld [vmem:[%s3300_s3 + $0xf0] sm:$0xf]  ;;  %v2803_v56 = vld [vmem:[%s3300_s3 + $0xf4] sm:$0xf] }
  0x81   :  { %1049 = vmatpush.bf16.msrb.mxu0 %v2100_v2  ;;  %v2360_v62 = vor.u32 %v2782_v60, %v2359_v59  ;;  %v2351_v2 = vld [vmem:[%s3300_s3 + $0x30] sm:$0xf] }
  0x82   :  { %1063 = vmatpush.bf16.msrb.mxu1 %v2164_v3  ;;  %v2780_v3 = vld [vmem:[%s3300_s3 + $0x34] sm:$0xf0] }
  0x83   :  { %1077 = vmatpush.bf16.msrb.mxu2 %v2228_v4  ;;  %v2779_v4 = vld [vmem:[%s3300_s3 + $0x34] sm:$0xf]  ;;  %v2352_v5 = vor.u32 %v2780_v3, %v2351_v2  ;;  %v2801_v3 = vld [vmem:[%s3300_s3 + $0xe4] sm:$0xf] }
  0x84   :  { %1091 = vmatpush.bf16.msrb.mxu3 %v2292_v8  ;;  %v2356_v7 = vor.u32 %v2779_v4, %v2353_v6  ;;  %v3146_v8 = vld [vmem:[%s3299_s2] sm:$0x3]  ;;  %v2441_v4 = vld [vmem:[%s3300_s3 + $0xe8] sm:$0xf0] }
  0x85   :  { %1050 = vmatpush.bf16.msrb.mxu0 %v2092_v15  ;;  %v2344_v15 = vor.u32 %v2778_v12, %v2343_v11  ;;  %v233_v19 = vperm.slane %v3146_v8, 0 }
  0x86   :  { %1064 = vmatpush.bf16.msrb.mxu1 %v2156_v16  ;;  %v2345_v16 = vld [vmem:[%s3300_s3 + $0x28] sm:$0xf0] }
  0x87   :  { %1078 = vmatpush.bf16.msrb.mxu2 %v2220_v18  ;;  %v2348_v18 = vor.u32 %v2777_v13, %v2345_v16  ;;  %v2431_v13 = vld [vmem:[%s3300_s3 + $0xd0] sm:$0xf] }
  0x88   :  { %1092 = vmatpush.bf16.msrb.mxu3 %v2284_v22  ;;  %v2775_v22 = vld [vmem:[%s3300_s3 + $0x14] sm:$0xf] }
  0x89   :  { %1051 = vmatpush.bf16.msrb.mxu0 %v2084_v28  ;;  %v2340_v25 = vor.u32 %v2775_v22, %v2337_v24  ;;  %v2797_v22 = vld [vmem:[%s3300_s3 + $0xc4] sm:$0xf]  ;;  %v2425_v24 = vld [vmem:[%s3300_s3 + $0xc8] sm:$0xf0] }
  0x8a   :  { %1065 = vmatpush.bf16.msrb.mxu1 %v2148_v29  ;;  %v2327_v29 = vld [vmem:[%s3300_s3] sm:$0xf] }
  0x8b   :  { %1079 = vmatpush.bf16.msrb.mxu2 %v2212_v30  ;;  %v2774_v30 = vld [vmem:[%s3300_s3 + $0x4] sm:$0xf0] }
  0x8c   :  { %1093 = vmatpush.bf16.msrb.mxu3 %v2276_v34  ;;  %v2328_v32 = vor.u32 %v2774_v30, %v2327_v29  ;;  %v2417_v30 = vld [vmem:[%s3300_s3 + $0xb8] sm:$0xf0] }
  0x8d   :  { %1052 = vmatpush.bf16.msrb.mxu0 %v2076_v41 }
  0x8e   :  { %1066 = vmatpush.bf16.msrb.mxu1 %v2140_v42 }
  0x8f   :  { %1080 = vmatpush.bf16.msrb.mxu2 %v2204_v45 }
  0x90   :  { %1094 = vmatpush.bf16.msrb.mxu3 %v2268_v46  ;;  %1053 = vmatmul.bf16.vlgmr.msrb.gmra.mxu0 %v3063_v39  ;;  %v2385_v39 = vld [vmem:[%s3300_s3 + $0x78] sm:$0xf0] }
  0x91   :  { %1067 = vmatmul.bf16.vlgmr.msrb.gmra.mxu1 %v3067_v44  ;;  %v2786_v44 = vld [vmem:[%s3300_s3 + $0x64] sm:$0xf0]  ;;  %1311 = vmatpush.bf16.msra.mxu0 %v2384_v50 }
  0x92   :  { %1081 = vmatmul.bf16.vlgmr.msrb.gmra.mxu2 %v3065_v43  ;;  %v2375_v43 = vld [vmem:[%s3300_s3 + $0x60] sm:$0xf] }
  0x93   :  { %1095 = vmatmul.bf16.vlgmr.msrb.gmra.mxu3 %v3069_v47  ;;  %v2388_v47 = vor.u32 %v2787_v49, %v2385_v39  ;;  %v2376_v53 = vor.u32 %v2786_v44, %v2375_v43 }
  0x95   :  { %1339 = vmatpush.bf16.msra.mxu2 %v2388_v47  ;;  %1312 = vmatpush.bf16.msra.mxu0 %v2376_v53 }
  0x99   :  { %1340 = vmatpush.bf16.msra.mxu2 %v2380_v58  ;;  %1313 = vmatpush.bf16.msra.mxu0 %v2368_v55  ;;  %v2804_v55 = vld [vmem:[%s3300_s3 + $0xf4] sm:$0xf0] }
  0x9a   :  { %v2448_v61 = vor.u32 %v2804_v55, %v2447_v10 }
  0x9c   :  { %1325 = vmatpush.bf16.msra.mxu1 %v2448_v61 }
  0x9d   :  { %1341 = vmatpush.bf16.msra.mxu2 %v2372_v57  ;;  %1314 = vmatpush.bf16.msra.mxu0 %v2360_v62  ;;  %v2449_v62 = vld [vmem:[%s3300_s3 + $0xf8] sm:$0xf0] }
  0x9e   :  { %v2452_v2 = vor.u32 %v2803_v56, %v2449_v62 }
  0xa0   :  { %1353 = vmatpush.bf16.msra.mxu3 %v2452_v2 }
  0xa1   :  { %1342 = vmatpush.bf16.msra.mxu2 %v2364_v0  ;;  %1315 = vmatpush.bf16.msra.mxu0 %v2352_v5  ;;  %v2802_v0 = vld [vmem:[%s3300_s3 + $0xe4] sm:$0xf0] }
  0xa2   :  { %v2440_v6 = vor.u32 %v2802_v0, %v2439_v63 }
  0xa4   :  { %1326 = vmatpush.bf16.msra.mxu1 %v2440_v6 }
  0xa5   :  { %1343 = vmatpush.bf16.msra.mxu2 %v2356_v7  ;;  %1316 = vmatpush.bf16.msra.mxu0 %v2344_v15  ;;  %v2444_v7 = vor.u32 %v2801_v3, %v2441_v4  ;;  %v2799_v15 = vld [vmem:[%s3300_s3 + $0xd4] sm:$0xf] }
  0xa7   :  { %1354 = vmatpush.bf16.msra.mxu3 %v2444_v7 }
  0xa9   :  { %1344 = vmatpush.bf16.msra.mxu2 %v2348_v18  ;;  %1317 = vmatpush.bf16.msra.mxu0 %v2336_v23  ;;  %v2433_v18 = vld [vmem:[%s3300_s3 + $0xd8] sm:$0xf0]  ;;  %v2424_v23 = vor.u32 %v2798_v21, %v2423_v20 }
  0xad   :  { %v886_v9 = vpop.f32.mrf.mxu0  ;;  %1345 = vmatpush.bf16.msra.mxu2 %v2340_v25  ;;  %1318 = vmatpush.bf16.msra.mxu0 %v2328_v32  ;;  %v2428_v25 = vor.u32 %v2797_v22, %v2425_v24  ;;  %v2407_v32 = vld [vmem:[%s3300_s3 + $0xa0] sm:$0xf]  ;;  %v2511_v22 = vld [vmem:[#allocation4 + $0x70] sm:$0xf]  ;;  %v2819_v24 = vld [vmem:[#allocation4 + $0x74] sm:$0xf] }
  0xae   :  { %v900_v14 = vpop.f32.mrf.mxu1  ;;  %v887_v27 = vadd.f32 %v886_v9, %v233_v19 }
  0xb0   :  { %v901_v37 = vadd.f32 %v900_v14, %v887_v27  ;;  %v2800_v14 = vld [vmem:[%s3300_s3 + $0xd4] sm:$0xf0] }
  0xb1   :  { %1346 = vmatpush.bf16.msra.mxu2 %v2332_v35  ;;  %v2432_v16 = vor.u32 %v2800_v14, %v2431_v13  ;;  %v2796_v27 = vld [vmem:[%s3300_s3 + $0xb4] sm:$0xf0]  ;;  %v2408_v35 = vor.u32 %v2794_v33, %v2407_v32  ;;  %v2575_v32 = vld [vmem:[#allocation4 + $0xf0] sm:$0xf] }
  0xb3   :  { %1327 = vmatpush.bf16.msra.mxu1 %v2432_v16 }
  0xb5   :  { %v914_v26 = vpop.f32.mrf.mxu2  ;;  %v888_v34 = vpop.f32.mrf.mxu0 }
  0xb6   :  { %v928_v28 = vpop.f32.mrf.mxu3  ;;  %v902_v36 = vpop.f32.mrf.mxu1  ;;  %v889_v38 = vadd.f32 %v888_v34, %v233_v19  ;;  %v915_v40 = vadd.f32 %v914_v26, %v901_v37  ;;  %v2436_v19 = vor.u32 %v2799_v15, %v2433_v18  ;;  %v2415_v26 = vld [vmem:[%s3300_s3 + $0xb0] sm:$0xf]  ;;  %v2793_v34 = vld [vmem:[%s3300_s3 + $0xa4] sm:$0xf] }
  0xb7   :  { %1328 = vmatpush.bf16.msra.mxu1 %v2424_v23  ;;  %v2416_v29 = vor.u32 %v2796_v27, %v2415_v26  ;;  %v2820_v23 = vld [vmem:[#allocation4 + $0x74] sm:$0xf0]  ;;  %v2513_v26 = vld [vmem:[#allocation4 + $0x78] sm:$0xf0]  ;;  %v2503_v27 = vld [vmem:[#allocation4 + $0x60] sm:$0xf] }
  0xb8   :  { %v903_v42 = vadd.f32 %v902_v36, %v889_v38  ;;  %v929_v46 = vadd.f32 %v928_v28, %v915_v40  ;;  %1355 = vmatpush.bf16.msra.mxu3 %v2436_v19  ;;  %v2795_v28 = vld [vmem:[%s3300_s3 + $0xb4] sm:$0xf]  ;;  %v2409_v36 = vld [vmem:[%s3300_s3 + $0xa8] sm:$0xf0]  ;;  %v2399_v40 = vld [vmem:[%s3300_s3 + $0x90] sm:$0xf] }
  0xb9   :  { %v2420_v31 = vor.u32 %v2795_v28, %v2417_v30  ;;  %v2412_v37 = vor.u32 %v2793_v34, %v2409_v36  ;;  %v2818_v28 = vld [vmem:[#allocation4 + $0x64] sm:$0xf0]  ;;  %v2817_v30 = vld [vmem:[#allocation4 + $0x64] sm:$0xf]  ;;  %v2836_v34 = vld [vmem:[#allocation4 + $0xf4] sm:$0xf0] }
  0xba   :  { %v2504_v33 = vor.u32 %v2818_v28, %v2503_v27  ;;  %v2577_v36 = vld [vmem:[#allocation4 + $0xf8] sm:$0xf0] }
  0xbb   :  { %1329 = vmatpush.bf16.msra.mxu1 %v2416_v29  ;;  %v2516_v29 = vor.u32 %v2819_v24, %v2513_v26  ;;  %v2463_v24 = vld [vmem:[#allocation4 + $0x10] sm:$0xf]  ;;  %v2807_v26 = vld [vmem:[#allocation4 + $0x14] sm:$0xf]  ;;  %v2465_v28 = vld [vmem:[#allocation4 + $0x18] sm:$0xf0] }
  0xbc   :  { %1356 = vmatpush.bf16.msra.mxu3 %v2428_v25  ;;  %v2512_v25 = vor.u32 %v2820_v23, %v2511_v22  ;;  %v2545_v22 = vld [vmem:[#allocation4 + $0xb8] sm:$0xf0] }
  0xbd   :  { %v916_v41 = vpop.f32.mrf.mxu2  ;;  %1605 = vmatpush.bf16.msrb.mxu2 %v2516_v29  ;;  %v2468_v29 = vor.u32 %v2807_v26, %v2465_v28  ;;  %v2838_v26 = vld [vmem:[#allocation6 + $0x8] sm:$0xff]  ;;  %v2837_v28 = vld [vmem:[#allocation6] sm:$0xff] }
  0xbe   :  { %v930_v45 = vpop.f32.mrf.mxu3  ;;  %v917_v49 = vadd.f32 %v916_v41, %v903_v42  ;;  %v2792_v41 = vld [vmem:[%s3300_s3 + $0x94] sm:$0xf0]  ;;  %v2791_v42 = vld [vmem:[%s3300_s3 + $0x94] sm:$0xf]  ;;  %1577 = vmatpush.bf16.msrb.mxu0 %v2512_v25 }
  0xbf   :  { %1330 = vmatpush.bf16.msra.mxu1 %v2408_v35  ;;  %v2835_v35 = vld [vmem:[#allocation4 + $0xf4] sm:$0xf]  ;;  %v2808_v25 = vld [vmem:[#allocation4 + $0x14] sm:$0xf0] }
  0xc0   :  { %v931_v39 = vadd.f32 %v930_v45, %v917_v49  ;;  %1357 = vmatpush.bf16.msra.mxu3 %v2420_v31  ;;  %v2400_v45 = vor.u32 %v2792_v41, %v2399_v40  ;;  %v2391_v49 = vld [vmem:[%s3300_s3 + $0x80] sm:$0xf]  ;;  %v2505_v31 = vld [vmem:[#allocation4 + $0x68] sm:$0xf0]  ;;  %v2580_v40 = vor.u32 %v2835_v35, %v2577_v36  ;;  %v2495_v41 = vld [vmem:[#allocation4 + $0x50] sm:$0xf]  ;;  %v2464_v27 = vor.u32 %v2808_v25, %v2463_v24 }
  0xc1   :  { %v2455_v36 = vld [vmem:[#allocation4] sm:$0xf]  ;;  %v2839_v24 = vld [vmem:[#allocation6 + $0x10] sm:$0xff]  ;;  %v2848_v25 = vld [vmem:[#allocation6 + $0x58] sm:$0xff] }
  0xc2   :  { %1578 = vmatpush.bf16.msrb.mxu0 %v2504_v33 }
  0xc3   :  { %1331 = vmatpush.bf16.msra.mxu1 %v2400_v45  ;;  %v2815_v45 = vld [vmem:[#allocation4 + $0x54] sm:$0xf] }
  0xc4   :  { %1358 = vmatpush.bf16.msra.mxu3 %v2412_v37  ;;  %v2508_v37 = vor.u32 %v2817_v30, %v2505_v31  ;;  %v2535_v30 = vld [vmem:[#allocation4 + $0xa0] sm:$0xf]  ;;  %v2826_v31 = vld [vmem:[#allocation4 + $0xa4] sm:$0xf0] }
  0xc5   :  { %v2536_v33 = vor.u32 %v2826_v31, %v2535_v30  ;;  %v2845_v30 = vld [vmem:[#allocation6 + $0x40] sm:$0xff] }
  0xc6   :  { %1606 = vmatpush.bf16.msrb.mxu2 %v2508_v37  ;;  %v2806_v37 = vld [vmem:[#allocation4 + $0x4] sm:$0xf0] }
  0xcd   :  { %v942_v48 = vpop.f32.mrf.mxu0 }
  0xce   :  { %v956_v1 = vpop.f32.mrf.mxu1  ;;  %v943_v50 = vadd.f32 %v942_v48, %v929_v46  ;;  %v2401_v46 = vld [vmem:[%s3300_s3 + $0x98] sm:$0xf0] }
  0xd0   :  { %v957_v44 = vadd.f32 %v956_v1, %v943_v50  ;;  %v2404_v1 = vor.u32 %v2791_v42, %v2401_v46  ;;  %v2790_v50 = vld [vmem:[%s3300_s3 + $0x84] sm:$0xf0]  ;;  %v2816_v42 = vld [vmem:[#allocation4 + $0x54] sm:$0xf0]  ;;  %v2497_v46 = vld [vmem:[#allocation4 + $0x58] sm:$0xf0] }
  0xd2   :  { %1359 = vmatpush.bf16.msra.mxu3 %v2404_v1  ;;  %v2834_v1 = vld [vmem:[#allocation4 + $0xe4] sm:$0xf0] }
  0xd5   :  { %v970_v43 = vpop.f32.mrf.mxu2  ;;  %v944_v47 = vpop.f32.mrf.mxu0 }
  0xd6   :  { %v984_v51 = vpop.f32.mrf.mxu3  ;;  %v945_v52 = vadd.f32 %v944_v47, %v931_v39  ;;  %v958_v53 = vpop.f32.mrf.mxu1  ;;  %v971_v58 = vadd.f32 %v970_v43, %v957_v44  ;;  %v2789_v39 = vld [vmem:[%s3300_s3 + $0x84] sm:$0xf]  ;;  %v234_v43 = vperm.slane %v3146_v8, 1  ;;  %v2392_v44 = vor.u32 %v2790_v50, %v2391_v49  ;;  %v2393_v47 = vld [vmem:[%s3300_s3 + $0x88] sm:$0xf0] }
  0xd7   :  { %v2833_v50 = vld [vmem:[#allocation4 + $0xe4] sm:$0xf] }
  0xd8   :  { %v959_v17 = vadd.f32 %v958_v53, %v945_v52  ;;  %v985_v57 = vadd.f32 %v984_v51, %v971_v58  ;;  %v2396_v52 = vor.u32 %v2789_v39, %v2393_v47  ;;  %1332 = vmatpush.bf16.msra.mxu1 %v2392_v44  ;;  %v2569_v39 = vld [vmem:[#allocation4 + $0xe8] sm:$0xf0]  ;;  %v2487_v47 = vld [vmem:[#allocation4 + $0x40] sm:$0xf] }
  0xd9   :  { %v2572_v44 = vor.u32 %v2833_v50, %v2569_v39  ;;  %v2519_v39 = vld [vmem:[#allocation4 + $0x80] sm:$0xf] }
  0xda   :  { %v1107_v9 = vmax.f32 %v985_v57, 0.0  ;;  %1360 = vmatpush.bf16.msra.mxu3 %v2396_v52  ;;  %v2500_v52 = vor.u32 %v2815_v45, %v2497_v46  ;;  %v2527_v45 = vld [vmem:[#allocation4 + $0x90] sm:$0xf]  ;;  %v2824_v46 = vld [vmem:[#allocation4 + $0x94] sm:$0xf0] }
  0xdc   :  { %1607 = vmatpush.bf16.msrb.mxu2 %v2500_v52 }
  0xdd   :  { %v972_v54 = vpop.f32.mrf.mxu2 }
  0xde   :  { %v973_v59 = vadd.f32 %v972_v54, %v959_v17  ;;  %v986_v60 = vpop.f32.mrf.mxu3  ;;  %1619 = vmatpush.bf16.msrb.mxu3 %v2580_v40  ;;  %v2456_v40 = vor.u32 %v2806_v37, %v2455_v36 }
  0xe0   :  { %v987_v5 = vadd.f32 %v986_v60, %v973_v59 }
  0xe2   :  { %v1109_v11 = vmax.f32 %v987_v5, 0.0  ;;  %1620 = vmatpush.bf16.msrb.mxu3 %v2572_v44  ;;  %v2821_v44 = vld [vmem:[#allocation4 + $0x84] sm:$0xf] }
  0xe4   :  { %v1111_v12 = vpack.c.bf16 %v1109_v11, %v1107_v9 }
  0xe6   :  { %1319 = vmatmul.bf16.vlgmr.msra.gmra.mxu0 %v1111_v12  ;;  %1347 = vmatmul.bf16.vlgmr.msra.gmra.mxu2 %v1111_v12 }
  0xed   :  { %v998_v38 = vpop.f32.mrf.mxu0 }
  0xee   :  { %v1012_v48 = vpop.f32.mrf.mxu1  ;;  %v999_v58 = vadd.f32 %v998_v38, %v234_v43  ;;  %v2576_v38 = vor.u32 %v2836_v34, %v2575_v32  ;;  %v2825_v32 = vld [vmem:[#allocation4 + $0xa4] sm:$0xf]  ;;  %v2537_v34 = vld [vmem:[#allocation4 + $0xa8] sm:$0xf0] }
  0xef   :  { %v2540_v35 = vor.u32 %v2825_v32, %v2537_v34  ;;  %v1411_v32 = vld [vmem:[%s3303_s6] sm:$0x3] }
  0xf0   :  { %v1013_v10 = vadd.f32 %v1012_v48, %v999_v58  ;;  %v2567_v48 = vld [vmem:[#allocation4 + $0xe0] sm:$0xf]  ;;  %1591 = vmatpush.bf16.msrb.mxu1 %v2576_v38  ;;  %v2832_v58 = vld [vmem:[#allocation4 + $0xd4] sm:$0xf0]  ;;  %v2805_v38 = vld [vmem:[#allocation4 + $0x4] sm:$0xf] }
  0xf1   :  { %v2568_v49 = vor.u32 %v2834_v1, %v2567_v48  ;;  %v2823_v48 = vld [vmem:[#allocation4 + $0x94] sm:$0xf]  ;;  %v2528_v1 = vor.u32 %v2824_v46, %v2527_v45 }
  0xf4   :  { %1592 = vmatpush.bf16.msrb.mxu1 %v2568_v49  ;;  %v2529_v49 = vld [vmem:[#allocation4 + $0x98] sm:$0xf0] }
  0xf5   :  { %v1026_v51 = vpop.f32.mrf.mxu2  ;;  %v1000_v17 = vpop.f32.mrf.mxu0  ;;  %v2532_v50 = vor.u32 %v2823_v48, %v2529_v49 }
  0xf6   :  { %v1040_v53 = vpop.f32.mrf.mxu3  ;;  %v1014_v54 = vpop.f32.mrf.mxu1  ;;  %v1001_v55 = vadd.f32 %v1000_v17, %v234_v43  ;;  %v1027_v57 = vadd.f32 %v1026_v51, %v1013_v10  ;;  %v2496_v43 = vor.u32 %v2816_v42, %v2495_v41  ;;  %v2814_v51 = vld [vmem:[#allocation4 + $0x44] sm:$0xf0]  ;;  %v2831_v17 = vld [vmem:[#allocation4 + $0xd4] sm:$0xf]  ;;  %v2489_v10 = vld [vmem:[#allocation4 + $0x48] sm:$0xf0] }
  0xf7   :  { %v2457_v41 = vld [vmem:[#allocation4 + $0x8] sm:$0xf0] }
  0xf8   :  { %v1015_v59 = vadd.f32 %v1014_v54, %v1001_v55  ;;  %v1041_v62 = vadd.f32 %v1040_v53, %v1027_v57  ;;  %v2559_v53 = vld [vmem:[#allocation4 + $0xd0] sm:$0xf]  ;;  %v2813_v54 = vld [vmem:[#allocation4 + $0x44] sm:$0xf]  ;;  %v2561_v55 = vld [vmem:[#allocation4 + $0xd8] sm:$0xf0]  ;;  %1579 = vmatpush.bf16.msrb.mxu0 %v2496_v43  ;;  %v2460_v42 = vor.u32 %v2805_v38, %v2457_v41 }
  0xf9   :  { %v2564_v57 = vor.u32 %v2831_v17, %v2561_v55  ;;  %v2822_v43 = vld [vmem:[#allocation4 + $0x84] sm:$0xf0]  ;;  %v2843_v17 = vld [vmem:[#allocation6 + $0x30] sm:$0xff]  ;;  %v1145_v55 = vld [vmem:[%s3301_s4] sm:$0x3]  ;;  %v1414_v41 = vperm.slane %v1411_v32, 1 }
  0xfb   :  { %1621 = vmatpush.bf16.msrb.mxu3 %v2564_v57 }
  0xfd   :  { %v1028_v56 = vpop.f32.mrf.mxu2 }
  0xfe   :  { %v1042_v60 = vpop.f32.mrf.mxu3  ;;  %v1029_v63 = vadd.f32 %v1028_v56, %v1015_v59  ;;  %v2560_v56 = vor.u32 %v2832_v58, %v2559_v53  ;;  %v2488_v59 = vor.u32 %v2814_v51, %v2487_v47  ;;  %v2520_v47 = vor.u32 %v2822_v43, %v2519_v39  ;;  %v2521_v51 = vld [vmem:[#allocation4 + $0x88] sm:$0xf0]  ;;  %v2844_v53 = vld [vmem:[#allocation6 + $0x38] sm:$0xff] }
  0xff   :  { %v2524_v52 = vor.u32 %v2821_v44, %v2521_v51  ;;  %v2852_v58 = vld [vmem:[#allocation6 + $0x78] sm:$0xff] }
 0x100   :  { %v1043_v3 = vadd.f32 %v1042_v60, %v1029_v63  ;;  %v2492_v60 = vor.u32 %v2813_v54, %v2489_v10  ;;  %1593 = vmatpush.bf16.msrb.mxu1 %v2560_v56  ;;  %1580 = vmatpush.bf16.msrb.mxu0 %v2488_v59  ;;  %v2842_v10 = vld [vmem:[#allocation6 + $0x28] sm:$0xff]  ;;  %v1147_v59 = vperm.slane %v1145_v55, 0 }
 0x102   :  { %1608 = vmatpush.bf16.msrb.mxu2 %v2492_v60 }
 0x10d   :  { %v1054_v8 = vpop.f32.mrf.mxu0 }
 0x10e   :  { %v1068_v61 = vpop.f32.mrf.mxu1  ;;  %v1055_v0 = vadd.f32 %v1054_v8, %v1041_v62  ;;  %v2479_v8 = vld [vmem:[#allocation4 + $0x30] sm:$0xf]  ;;  %v2811_v62 = vld [vmem:[#allocation4 + $0x34] sm:$0xf] }
 0x110   :  { %v1069_v6 = vadd.f32 %v1068_v61, %v1055_v0  ;;  %v2812_v61 = vld [vmem:[#allocation4 + $0x34] sm:$0xf0]  ;;  %v2481_v0 = vld [vmem:[#allocation4 + $0x38] sm:$0xf0] }
 0x111   :  { %v2480_v63 = vor.u32 %v2812_v61, %v2479_v8 }
 0x113   :  { %1581 = vmatpush.bf16.msrb.mxu0 %v2480_v63 }
 0x115   :  { %v1082_v2 = vpop.f32.mrf.mxu2  ;;  %v1056_v5 = vpop.f32.mrf.mxu0 }
 0x116   :  { %v1096_v4 = vpop.f32.mrf.mxu3  ;;  %v1057_v7 = vadd.f32 %v1056_v5, %v1043_v3  ;;  %v1083_v9 = vadd.f32 %v1082_v2, %v1069_v6  ;;  %v1070_v11 = vpop.f32.mrf.mxu1  ;;  %v2484_v2 = vor.u32 %v2811_v62, %v2481_v0  ;;  %v2551_v3 = vld [vmem:[#allocation4 + $0xc0] sm:$0xf]  ;;  %v2829_v5 = vld [vmem:[#allocation4 + $0xc4] sm:$0xf]  ;;  %v1148_v62 = vperm.slane %v1145_v55, 1 }
 0x118   :  { %v1071_v12 = vadd.f32 %v1070_v11, %v1057_v7  ;;  %v1097_v14 = vadd.f32 %v1096_v4, %v1083_v9  ;;  %v2830_v4 = vld [vmem:[#allocation4 + $0xc4] sm:$0xf0]  ;;  %v2553_v7 = vld [vmem:[#allocation4 + $0xc8] sm:$0xf0]  ;;  %1609 = vmatpush.bf16.msrb.mxu2 %v2484_v2  ;;  %v2471_v11 = vld [vmem:[#allocation4 + $0x20] sm:$0xf] }
 0x119   :  { %v2552_v6 = vor.u32 %v2830_v4, %v2551_v3  ;;  %v2556_v9 = vor.u32 %v2829_v5, %v2553_v7 }
 0x11a   :  { %v1108_v19 = vmax.f32 %v1097_v14, 0.0 }
 0x11b   :  { %1594 = vmatpush.bf16.msrb.mxu1 %v2552_v6  ;;  %1622 = vmatpush.bf16.msrb.mxu3 %v2556_v9 }
 0x11d   :  { %v1084_v13 = vpop.f32.mrf.mxu2 }
 0x11e   :  { %v1085_v15 = vadd.f32 %v1084_v13, %v1071_v12  ;;  %v1098_v16 = vpop.f32.mrf.mxu3  ;;  %v2810_v12 = vld [vmem:[#allocation4 + $0x24] sm:$0xf0]  ;;  %v2809_v13 = vld [vmem:[#allocation4 + $0x24] sm:$0xf] }
 0x11f   :  { %v2472_v14 = vor.u32 %v2810_v12, %v2471_v11 }
 0x120   :  { %v1099_v18 = vadd.f32 %v1098_v16, %v1085_v15  ;;  %v2473_v15 = vld [vmem:[#allocation4 + $0x28] sm:$0xf0] }
 0x121   :  { %v2476_v16 = vor.u32 %v2809_v13, %v2473_v15  ;;  %1582 = vmatpush.bf16.msrb.mxu0 %v2472_v14 }
 0x122   :  { %v1110_v20 = vmax.f32 %v1099_v18, 0.0  ;;  %v2543_v18 = vld [vmem:[#allocation4 + $0xb0] sm:$0xf] }
 0x123   :  { %1610 = vmatpush.bf16.msrb.mxu2 %v2476_v16 }
 0x124   :  { %v1112_v21 = vpack.c.bf16 %v1110_v20, %v1108_v19  ;;  %v2828_v19 = vld [vmem:[#allocation4 + $0xb4] sm:$0xf0]  ;;  %v2827_v20 = vld [vmem:[#allocation4 + $0xb4] sm:$0xf] }
 0x125   :  { %v2548_v23 = vor.u32 %v2827_v20, %v2545_v22  ;;  %1583 = vmatpush.bf16.msrb.mxu0 %v2464_v27  ;;  %v2841_v20 = vld [vmem:[#allocation6 + $0x20] sm:$0xff]  ;;  %v2840_v22 = vld [vmem:[#allocation6 + $0x18] sm:$0xff]  ;;  %v2847_v27 = vld [vmem:[#allocation6 + $0x50] sm:$0xff] }
 0x126   :  { %1333 = vmatmul.bf16.vlgmr.msra.gmra.mxu1 %v1112_v21  ;;  %1361 = vmatmul.bf16.vlgmr.msra.gmra.mxu3 %v1112_v21  ;;  %v2544_v21 = vor.u32 %v2828_v19, %v2543_v18  ;;  %v2851_v19 = vld [vmem:[#allocation6 + $0x70] sm:$0xff] }
 0x127   :  { %1623 = vmatpush.bf16.msrb.mxu3 %v2548_v23  ;;  %1611 = vmatpush.bf16.msrb.mxu2 %v2468_v29  ;;  %v2849_v23 = vld [vmem:[#allocation6 + $0x60] sm:$0xff]  ;;  %v2846_v29 = vld [vmem:[#allocation6 + $0x48] sm:$0xff] }
 0x128   :  { %1595 = vmatpush.bf16.msrb.mxu1 %v2544_v21  ;;  %v2850_v21 = vld [vmem:[#allocation6 + $0x68] sm:$0xff] }
 0x129   :  { %1584 = vmatpush.bf16.msrb.mxu0 %v2456_v40 }
 0x12b   :  { %1624 = vmatpush.bf16.msrb.mxu3 %v2540_v35  ;;  %1612 = vmatpush.bf16.msrb.mxu2 %v2460_v42  ;;  %v1413_v35 = vperm.slane %v1411_v32, 0 }
 0x12c   :  { %1596 = vmatpush.bf16.msrb.mxu1 %v2536_v33 }
 0x12d   :  { %1777 = vmatpush.bf16.msra.mxu0 %v2844_v53 }
 0x12f   :  { %1625 = vmatpush.bf16.msrb.mxu3 %v2532_v50 }
 0x130   :  { %1597 = vmatpush.bf16.msrb.mxu1 %v2528_v1 }
 0x131   :  { %1778 = vmatpush.bf16.msra.mxu0 %v2843_v17 }
 0x133   :  { %1626 = vmatpush.bf16.msrb.mxu3 %v2524_v52 }
 0x134   :  { %1598 = vmatpush.bf16.msrb.mxu1 %v2520_v47 }
 0x135   :  { %1779 = vmatpush.bf16.msra.mxu0 %v2842_v10 }
 0x138   :  { %1791 = vmatpush.bf16.msra.mxu1 %v2852_v58 }
 0x139   :  { %1780 = vmatpush.bf16.msra.mxu0 %v2841_v20 }
 0x13c   :  { %1792 = vmatpush.bf16.msra.mxu1 %v2851_v19 }
 0x13d   :  { %1781 = vmatpush.bf16.msra.mxu0 %v2840_v22 }
 0x140   :  { %1793 = vmatpush.bf16.msra.mxu1 %v2850_v21 }
 0x141   :  { %1782 = vmatpush.bf16.msra.mxu0 %v2839_v24 }
 0x144   :  { %1794 = vmatpush.bf16.msra.mxu1 %v2849_v23 }
 0x145   :  { %1783 = vmatpush.bf16.msra.mxu0 %v2838_v26 }
 0x148   :  { %1795 = vmatpush.bf16.msra.mxu1 %v2848_v25 }
 0x149   :  { %1784 = vmatpush.bf16.msra.mxu0 %v2837_v28 }
 0x14c   :  { %1796 = vmatpush.bf16.msra.mxu1 %v2847_v27 }
 0x150   :  { %1797 = vmatpush.bf16.msra.mxu1 %v2846_v29 }
 0x154   :  { %1798 = vmatpush.bf16.msra.mxu1 %v2845_v30 }
 0x163   :  { %v1320_v54 = vpop.f32.mrf.mxu0 }
 0x164   :  { %v1321_v8 = vadd.f32 %v1320_v54, %v1147_v59  ;;  %v2860_v54 = vld [vmem:[%s3305_s8] ss:$0 sm:$0xff] }
 0x169   :  { %v1348_v56 = vpop.f32.mrf.mxu2 }
 0x16a   :  { %v1349_v5 = vadd.f32 %v1348_v56, %v1148_v62 }
 0x16b   :  { %v1322_v60 = vpop.f32.mrf.mxu0 }
 0x16c   :  { %v1323_v63 = vadd.f32 %v1322_v60, %v1147_v59 }
 0x171   :  { %v1350_v4 = vpop.f32.mrf.mxu2 }
 0x172   :  { %v1351_v9 = vadd.f32 %v1350_v4, %v1148_v62 }
 0x1a3   :  { %v1334_v57 = vpop.f32.mrf.mxu1 }
 0x1a4   :  { %v1335_v0 = vadd.f32 %v1334_v57, %v1321_v8 }
 0x1a6   :  { %v1373_v6 = vmax.f32 %v1335_v0, 0.0 }
 0x1a9   :  { %v1362_v61 = vpop.f32.mrf.mxu3 }
 0x1aa   :  { %v1363_v11 = vadd.f32 %v1362_v61, %v1349_v5 }
 0x1ab   :  { %v1336_v2 = vpop.f32.mrf.mxu1 }
 0x1ac   :  { %v1337_v3 = vadd.f32 %v1336_v2, %v1323_v63  ;;  %v1374_v15 = vmax.f32 %v1363_v11, 0.0 }
 0x1ae   :  { %v1375_v7 = vmax.f32 %v1337_v3, 0.0 }
 0x1b0   :  { %v1377_v12 = vpack.c.bf16 %v1375_v7, %v1373_v6 }
 0x1b1   :  { %v1364_v13 = vpop.f32.mrf.mxu3 }
 0x1b2   :  { %v1365_v14 = vadd.f32 %v1364_v13, %v1351_v9  ;;  %1585 = vmatmul.bf16.vlgmr.msrb.gmra.mxu0 %v1377_v12  ;;  %1613 = vmatmul.bf16.vlgmr.msrb.gmra.mxu2 %v1377_v12 }
 0x1b4   :  { %v1376_v16 = vmax.f32 %v1365_v14, 0.0 }
 0x1b6   :  { %v1378_v18 = vpack.c.bf16 %v1376_v16, %v1374_v15 }
 0x1b8   :  { %1599 = vmatmul.bf16.vlgmr.msrb.gmra.mxu1 %v1378_v18  ;;  %1627 = vmatmul.bf16.vlgmr.msrb.gmra.mxu3 %v1378_v18 }
 0x22f   :  { %v1586_v31 = vpop.f32.mrf.mxu0 }
 0x230   :  { %v1587_v37 = vadd.f32 %v1586_v31, %v1413_v35 }
 0x235   :  { %v1600_v33 = vpop.f32.mrf.mxu1  ;;  %v1614_v34 = vpop.f32.mrf.mxu2 }
 0x236   :  { %v1601_v40 = vadd.f32 %v1600_v33, %v1587_v37  ;;  %v1615_v49 = vadd.f32 %v1614_v34, %v1414_v41 }
 0x237   :  { %v1588_v36 = vpop.f32.mrf.mxu0 }
 0x238   :  { %v1589_v42 = vadd.f32 %v1588_v36, %v1413_v35  ;;  %v1639_v1 = vmax.f32 %v1601_v40, 0.0 }
 0x23b   :  { %v1628_v38 = vpop.f32.mrf.mxu3 }
 0x23c   :  { %v1629_v39 = vadd.f32 %v1628_v38, %v1615_v49 }
 0x23d   :  { %v1602_v45 = vpop.f32.mrf.mxu1  ;;  %v1616_v48 = vpop.f32.mrf.mxu2 }
 0x23e   :  { %v1603_v46 = vadd.f32 %v1602_v45, %v1589_v42  ;;  %v1617_v44 = vadd.f32 %v1616_v48, %v1414_v41  ;;  %v1640_v52 = vmax.f32 %v1629_v39, 0.0 }
 0x240   :  { %v1641_v50 = vmax.f32 %v1603_v46, 0.0 }
 0x242   :  { %v1643_v43 = vpack.c.bf16 %v1641_v50, %v1639_v1 }
 0x243   :  { %v1630_v47 = vpop.f32.mrf.mxu3 }
 0x244   :  { %v1631_v51 = vadd.f32 %v1630_v47, %v1617_v44  ;;  %1785 = vmatmul.bf16.vlgmr.msra.gmra.mxu0 %v1643_v43 }
 0x246   :  { %v1642_v53 = vmax.f32 %v1631_v51, 0.0 }
 0x248   :  { %v1644_v58 = vpack.c.bf16 %v1642_v53, %v1640_v52 }
 0x24a   :  { %1799 = vmatmul.bf16.vlgmr.msra.gmra.mxu1 %v1644_v58 }
 0x2c1   :  { %v1786_v17 = vpop.f32.mrf.mxu0 }
 0x2c2   :  { %v1787_v10 = vadd.f32 %v2860_v54, %v1786_v17 }
 0x2c7   :  { %v1800_v55 = vpop.f32.mrf.mxu1 }
 0x2c8   :  { %v1801_v56 = vadd.f32 %v1800_v55, %v1787_v10 }
 0x2c9   :  { %v1788_v57 = vpop.f32.mrf.mxu0 }
 0x2ca   :  { %1805 = vst [vmem:[%s3306_s9] sm:$0xff] %v1801_v56  ;;  %v1789_v59 = vadd.f32 %v2860_v54, %v1788_v57 }
 0x2cf   :  { %v1802_v60 = vpop.f32.mrf.mxu1 }
 0x2d0   :  { %v1803_v8 = vadd.f32 %v1802_v60, %v1789_v59 }
 0x2d2   :  { %1806 = vst [vmem:[%s3306_s9 + $0x8] sm:$0xff] %v1803_v8 }
 0x2d3   :  { %1811 = vsyncpa [#allocation3], 1 }
 0x2d4   :  { %1812 = vsyncpa [#allocation5], 1 }

</bundles_post_ra>
